<compile_context>
chip_gen: v7x
topology: tpu7x:2x2x1
jax: 0.10.0
libtpu: 0.0.40
codegen_flags: <defaults>
</compile_context>

<pallas_src>
import functools

import jax
import jax.numpy as jnp
from jax import lax
from jax.experimental import pallas as pl
from jax.experimental.pallas import tpu as pltpu


def _round_up(x, m):
    return (x + m - 1) // m * m


# ----------------------------------------------------------------------------
# Pallas kernel: the serial LSTM recurrence (everything else is hoisted out).
# ----------------------------------------------------------------------------
def lstm_recurrence_kernel(gx_ref, whh_ref, hall_ref, hN_ref, cN_ref,
                           h_sc, c_sc, *, t_blk, t_real, hp):
    """One grid step processes t_blk timesteps.

    gx_ref  : (t_blk, Bp, 4*Hp)  precomputed x@W_ih^T + (b_ih+b_hh), padded
    whh_ref : (Hp, 4*Hp)         W_hh^T, padded (zero rows/cols in padding)
    hall_ref: (t_blk, Bp, Hp)    hidden states for these timesteps
    hN/cN   : (Bp, Hp)           final state (written on last grid step)
    h_sc/c_sc: VMEM scratch carrying the recurrent state across grid steps
    """
    g = pl.program_id(0)

    # Initial hidden state is zeros (h=None in the PyTorch forward).
    @pl.when(g == 0)
    def _():
        h_sc[...] = jnp.zeros_like(h_sc)
        c_sc[...] = jnp.zeros_like(c_sc)

    def step(i, carry):
        h = h_sc[...]                    # (Bp, Hp)
        c = c_sc[...]                    # (Bp, Hp)
        # Only the recurrent matmul remains on the serial path.
        gates = gx_ref[i] + jnp.dot(h, whh_ref[...],
                                    preferred_element_type=jnp.float32)
        # Hp is a multiple of 128 -> each gate slice is exactly lane-tile aligned.
        i_g = jax.nn.sigmoid(gates[:, 0 * hp:1 * hp])
        f_g = jax.nn.sigmoid(gates[:, 1 * hp:2 * hp])
        g_g = jnp.tanh(gates[:, 2 * hp:3 * hp])
        o_g = jax.nn.sigmoid(gates[:, 3 * hp:4 * hp])

        c_new = f_g * c + i_g * g_g
        h_new = o_g * jnp.tanh(c_new)

        if t_real % t_blk == 0:
            # No padded timesteps: always commit the state.
            h_sc[...] = h_new
            c_sc[...] = c_new
        else:
            # Freeze the state on padded timesteps so hN/cN reflect step T-1.
            valid = (g * t_blk + i) < t_real
            h_sc[...] = jnp.where(valid, h_new, h)
            c_sc[...] = jnp.where(valid, c_new, c)

        # Lane-dense (8, 128)-tile write into the output slab for this block.
        hall_ref[i] = h_new
        return carry

    # Unrolled so the LLO scheduler can overlap MXU / EUP / VPU across steps.
    lax.fori_loop(0, t_blk, step, 0, unroll=True)

    @pl.when(g == pl.num_programs(0) - 1)
    def _():
        hN_ref[...] = h_sc[...]
        cN_ref[...] = c_sc[...]


# ----------------------------------------------------------------------------
# One-time parameter preprocessing (transpose / fuse bias / pad to TPU tiles).
# ----------------------------------------------------------------------------
def prepare_params(params):
    w_ih = params["w_ih"].astype(jnp.float32)     # (4H, E), gate order i,f,g,o
    w_hh = params["w_hh"].astype(jnp.float32)     # (4H, H)
    w_fc = params["w_fc"].astype(jnp.float32)     # (C, H)
    four_h = w_ih.shape[0]
    h = four_h // 4
    hp = _round_up(h, 128)                        # 128-lane granule

    def pad_gates_t(w):
        # (4H, K) -> (K, 4*Hp): transpose, then zero-pad each gate block to Hp.
        k = w.shape[1]
        wt = w.T.reshape(k, 4, h)
        wt = jnp.pad(wt, ((0, 0), (0, 0), (0, hp - h)))
        return wt.reshape(k, 4 * hp)

    wih_t = pad_gates_t(w_ih)                                  # (E, 4Hp)
    whh_t = jnp.pad(pad_gates_t(w_hh), ((0, hp - h), (0, 0)))  # (Hp, 4Hp)
    b = (params["b_ih"] + params["b_hh"]).astype(jnp.float32).reshape(4, h)
    b = jnp.pad(b, ((0, 0), (0, hp - h))).reshape(4 * hp)      # (4Hp,)

    return {
        "embedding": params["embedding"].astype(jnp.float32),
        "wih_t": wih_t,
        "whh_t": whh_t,
        "b": b,
        "wfc_t": w_fc.T,                                       # (H, C)
        "b_fc": params["b_fc"].astype(jnp.float32),
    }


# ----------------------------------------------------------------------------
# Forward pass:  Embedding -> (big matmul) -> Pallas recurrence -> (big matmul)
# ----------------------------------------------------------------------------
def lstm_forward(input_seq, prep, *, t_blk=None):
    """input_seq: (B, T) int32 tokens. Returns (output (B,T,C), (h_n, c_n))."""
    B, T = input_seq.shape
    H = prep["wfc_t"].shape[0]
    C = prep["wfc_t"].shape[1]
    Hp = prep["whh_t"].shape[0]
    Bp = _round_up(max(B, 8), 8)                  # fill f32 sublanes
    if t_blk is None:
        t_blk = min(_round_up(T, 8), 32)          # timesteps per grid step
    t_pad = _round_up(T, t_blk)

    # --- glue (XLA): embedding gather + hoisted input projection -------------
    emb = prep["embedding"][input_seq]                           # (B, T, E)
    # One big (T*B, E) @ (E, 4Hp) matmul, time-major output, bias fused.
    gx = jnp.einsum("bte,eg->tbg", emb, prep["wih_t"]) + prep["b"]
    gx = jnp.pad(gx, ((0, t_pad - T), (0, Bp - B), (0, 0)))      # (Tp, Bp, 4Hp)

    kernel = functools.partial(lstm_recurrence_kernel,
                               t_blk=t_blk, t_real=T, hp=Hp)
    cost = pl.CostEstimate(
        flops=t_pad * (2 * Bp * Hp * 4 * Hp + 10 * Bp * 4 * Hp),
        transcendentals=t_pad * Bp * 5 * Hp,
        bytes_accessed=4 * (gx.size + t_pad * Bp * Hp + 2 * Bp * Hp
                            + Hp * 4 * Hp),
    )

    h_all, hN, cN = pl.pallas_call(
        kernel,
        out_shape=(jax.ShapeDtypeStruct((t_pad, Bp, Hp), jnp.float32),
                   jax.ShapeDtypeStruct((Bp, Hp), jnp.float32),
                   jax.ShapeDtypeStruct((Bp, Hp), jnp.float32)),
        grid_spec=pltpu.PrefetchScalarGridSpec(
            num_scalar_prefetch=0,
            grid=(t_pad // t_blk,),
            in_specs=[
                pl.BlockSpec((t_blk, Bp, 4 * Hp), lambda g: (g, 0, 0)),  # gx
                pl.BlockSpec((Hp, 4 * Hp), lambda g: (0, 0)),            # W_hh^T
            ],
            out_specs=[
                pl.BlockSpec((t_blk, Bp, Hp), lambda g: (g, 0, 0)),      # h seq
                pl.BlockSpec((Bp, Hp), lambda g: (0, 0)),                # h_N
                pl.BlockSpec((Bp, Hp), lambda g: (0, 0)),                # c_N
            ],
            scratch_shapes=[pltpu.VMEM((Bp, Hp), jnp.float32),
                            pltpu.VMEM((Bp, Hp), jnp.float32)]),
        compiler_params=pltpu.CompilerParams(
            dimension_semantics=("arbitrary",)),   # sequential recurrence over T
        cost_estimate=cost,
    )(gx, prep["whh_t"])

    # --- glue (XLA): deferred FC projection as one big matmul ----------------
    h_seq = h_all[:T, :B, :H]                                    # (T, B, H)
    output = jnp.einsum("tbh,hc->btc", h_seq, prep["wfc_t"]) + prep["b_fc"]
    hidden = (hN[None, :B, :H], cN[None, :B, :H])                # (1, B, H) each
    return output, hidden


# ----------------------------------------------------------------------------
# Pure-JAX reference (for correctness check) and parameter init.
# ----------------------------------------------------------------------------
def lstm_forward_ref(input_seq, params):
    emb = params["embedding"][input_seq]
    x = jnp.transpose(emb, (1, 0, 2)).astype(jnp.float32)        # (T, B, E)
    B = input_seq.shape[0]
    H = params["w_hh"].shape[1]
    wih_t = params["w_ih"].T
    whh_t = params["w_hh"].T
    b = params["b_ih"] + params["b_hh"]

    def step(carry, x_t):
        h, c = carry
        gates = x_t @ wih_t + h @ whh_t + b
        i_g = jax.nn.sigmoid(gates[:, 0 * H:1 * H])
        f_g = jax.nn.sigmoid(gates[:, 1 * H:2 * H])
        g_g = jnp.tanh(gates[:, 2 * H:3 * H])
        o_g = jax.nn.sigmoid(gates[:, 3 * H:4 * H])
        c = f_g * c + i_g * g_g
        h = o_g * jnp.tanh(c)
        return (h, c), h

    init = (jnp.zeros((B, H), jnp.float32), jnp.zeros((B, H), jnp.float32))
    (hN, cN), hs = lax.scan(step, init, x)
    out = jnp.einsum("tbh,ch->btc", hs, params["w_fc"]) + params["b_fc"]
    return out, (hN[None], cN[None])


def init_params(key, vocab_size, emb_size, hidden_size, num_char):
    # Matches the module's init_weights(): weights ~ U[0,1), biases = 0.
    ks = jax.random.split(key, 5)
    return {
        "embedding": jax.random.uniform(ks[0], (vocab_size, emb_size), jnp.float32),
        "w_ih": jax.random.uniform(ks[1], (4 * hidden_size, emb_size), jnp.float32),
        "w_hh": jax.random.uniform(ks[2], (4 * hidden_size, hidden_size), jnp.float32),
        "b_ih": jnp.zeros((4 * hidden_size,), jnp.float32),
        "b_hh": jnp.zeros((4 * hidden_size,), jnp.float32),
        "w_fc": jax.random.uniform(ks[3], (num_char, hidden_size), jnp.float32),
        "b_fc": jnp.zeros((num_char,), jnp.float32),
    }


if __name__ == "__main__":
    vocab_size = 16
    emb_size = 32
    hidden_size = 32
    num_char = vocab_size
    B, T = 2, 8

    key = jax.random.PRNGKey(0)
    k_params, k_tokens = jax.random.split(key)
    params = init_params(k_params, vocab_size, emb_size, hidden_size, num_char)
    prep = prepare_params(params)
    input_seq = jax.random.randint(k_tokens, (B, T), 0, vocab_size, dtype=jnp.int32)

    fwd = jax.jit(lstm_forward)
    output, (h_n, c_n) = fwd(input_seq, prep)
    jax.block_until_ready((output, h_n, c_n))

    assert output.shape == (B, T, num_char)
    assert h_n.shape == (1, B, hidden_size) and c_n.shape == (1, B, hidden_size)

    # Correctness check against a pure-JAX reference (loose tol: MXU f32 passes).
    ref_out, (ref_h, ref_c) = lstm_forward_ref(input_seq, params)
    assert jnp.allclose(output, ref_out, rtol=2e-2, atol=2e-2)
    assert jnp.allclose(h_n, ref_h, rtol=2e-2, atol=2e-2)
    assert jnp.allclose(c_n, ref_c, rtol=2e-2, atol=2e-2)

    print("KERNEL_OK")
</pallas_src>

<mosaic_0001>
module attributes {stable_mosaic.version = 11 : i64} {
  func.func @lstm_recurrence_kernel(%arg0: i32, %arg1: memref<8x8x512xf32, #tpu.memory_space<vmem>>, %arg2: memref<128x512xf32, #tpu.memory_space<vmem>>, %arg3: memref<8x8x128xf32, #tpu.memory_space<vmem>>, %arg4: memref<8x128xf32, #tpu.memory_space<vmem>>, %arg5: memref<8x128xf32, #tpu.memory_space<vmem>>, %arg6: memref<8x128xf32, #tpu.memory_space<vmem>>, %arg7: memref<8x128xf32, #tpu.memory_space<vmem>>) attributes {dimension_semantics = [#tpu.dimension_semantics<arbitrary>], iteration_bounds = array<i64: 1>, scalar_prefetch = 0 : i64, scratch_operands = 2 : i64, tpu.core_type = #tpu.core_type<tc>, window_params = [{transform_indices = @transform_0, window_bounds = array<i64: 8, 8, 512>}, {pipeline_mode = #tpu.pipeline_mode<synchronous>, transform_indices = @transform_1, window_bounds = array<i64: 128, 512>}, {transform_indices = @transform_2, window_bounds = array<i64: 8, 8, 128>}, {pipeline_mode = #tpu.pipeline_mode<synchronous>, transform_indices = @transform_3, window_bounds = array<i64: 8, 128>}, {pipeline_mode = #tpu.pipeline_mode<synchronous>, transform_indices = @transform_4, window_bounds = array<i64: 8, 128>}]} {
    %c0_i32 = arith.constant 0 : i32
    %0 = arith.cmpi eq, %arg0, %c0_i32 : i32
    %1 = arith.extui %0 : i1 to i32
    %c0_i32_0 = arith.constant 0 : i32
    %2 = arith.cmpi ne, %1, %c0_i32_0 : i32
    scf.if %2 {
      %cst_146 = arith.constant 0.000000e+00 : f32
      %318 = vector.broadcast %cst_146 : f32 to vector<8x128xf32>
      %c0_147 = arith.constant 0 : index
      %c0_148 = arith.constant 0 : index
      %319 = vector.load %arg6[%c0_147, %c0_148] : memref<8x128xf32, #tpu.memory_space<vmem>>, vector<8x128xf32>
      tpu.vector_store %arg6[%c0_147, %c0_148], %318 {strides = array<i32>} : memref<8x128xf32, #tpu.memory_space<vmem>>, vector<8x128xf32>,
      %cst_149 = arith.constant 0.000000e+00 : f32
      %320 = vector.broadcast %cst_149 : f32 to vector<8x128xf32>
      %c0_150 = arith.constant 0 : index
      %c0_151 = arith.constant 0 : index
      %321 = vector.load %arg7[%c0_150, %c0_151] : memref<8x128xf32, #tpu.memory_space<vmem>>, vector<8x128xf32>
      tpu.vector_store %arg7[%c0_150, %c0_151], %320 {strides = array<i32>} : memref<8x128xf32, #tpu.memory_space<vmem>>, vector<8x128xf32>,
    } else {
    }
    %c0_i32_1 = arith.constant 0 : i32
    %c0 = arith.constant 0 : index
    %c0_2 = arith.constant 0 : index
    %3 = vector.load %arg6[%c0, %c0_2] : memref<8x128xf32, #tpu.memory_space<vmem>>, vector<8x128xf32>
    %c0_3 = arith.constant 0 : index
    %c0_4 = arith.constant 0 : index
    %4 = vector.load %arg7[%c0_3, %c0_4] : memref<8x128xf32, #tpu.memory_space<vmem>>, vector<8x128xf32>
    %5 = arith.index_cast %c0_i32_1 : i32 to index
    %c0_5 = arith.constant 0 : index
    %c0_6 = arith.constant 0 : index
    %6 = vector.load %arg1[%5, %c0_5, %c0_6] : memref<8x8x512xf32, #tpu.memory_space<vmem>>, vector<1x8x512xf32>
    %7 = vector.shape_cast %6 : vector<1x8x512xf32> to vector<8x512xf32>
    %c0_7 = arith.constant 0 : index
    %c0_8 = arith.constant 0 : index
    %8 = vector.load %arg2[%c0_7, %c0_8] : memref<128x512xf32, #tpu.memory_space<vmem>>, vector<128x512xf32>
    %cst = arith.constant dense<0.000000e+00> : vector<8x512xf32>
    %9 = tpu.matmul %3, %8, %cst {dimension_numbers = #tpu.dot_dimension_numbers<[1], [0], [0], [1], [0, 0, 1, 1], [], []>} : vector<8x128xf32>, vector<128x512xf32>, vector<8x512xf32> -> vector<8x512xf32>
    %10 = arith.addf %7, %9 : vector<8x512xf32>
    %11 = vector.extract_strided_slice %10 {offsets = [0, 0], sizes = [8, 128], strides = [1, 1]} : vector<8x512xf32> to vector<8x128xf32>
    %12 = arith.negf %11 : vector<8x128xf32>
    %13 = math.exp %12 : vector<8x128xf32>
    %cst_9 = arith.constant 1.000000e+00 : f32
    %14 = vector.broadcast %cst_9 : f32 to vector<8x128xf32>
    %15 = arith.addf %14, %13 : vector<8x128xf32>
    %16 = arith.divf %14, %15 : vector<8x128xf32>
    %17 = vector.extract_strided_slice %10 {offsets = [0, 128], sizes = [8, 128], strides = [1, 1]} : vector<8x512xf32> to vector<8x128xf32>
    %18 = arith.negf %17 : vector<8x128xf32>
    %19 = math.exp %18 : vector<8x128xf32>
    %cst_10 = arith.constant 1.000000e+00 : f32
    %20 = vector.broadcast %cst_10 : f32 to vector<8x128xf32>
    %21 = arith.addf %20, %19 : vector<8x128xf32>
    %22 = arith.divf %20, %21 : vector<8x128xf32>
    %23 = vector.extract_strided_slice %10 {offsets = [0, 256], sizes = [8, 128], strides = [1, 1]} : vector<8x512xf32> to vector<8x128xf32>
    %24 = math.tanh %23 : vector<8x128xf32>
    %25 = vector.extract_strided_slice %10 {offsets = [0, 384], sizes = [8, 128], strides = [1, 1]} : vector<8x512xf32> to vector<8x128xf32>
    %26 = arith.negf %25 : vector<8x128xf32>
    %27 = math.exp %26 : vector<8x128xf32>
    %cst_11 = arith.constant 1.000000e+00 : f32
    %28 = vector.broadcast %cst_11 : f32 to vector<8x128xf32>
    %29 = arith.addf %28, %27 : vector<8x128xf32>
    %30 = arith.divf %28, %29 : vector<8x128xf32>
    %31 = arith.mulf %22, %4 : vector<8x128xf32>
    %32 = arith.mulf %16, %24 : vector<8x128xf32>
    %33 = arith.addf %31, %32 : vector<8x128xf32>
    %34 = math.tanh %33 : vector<8x128xf32>
    %35 = arith.mulf %30, %34 : vector<8x128xf32>
    %c0_12 = arith.constant 0 : index
    %c0_13 = arith.constant 0 : index
    %36 = vector.load %arg6[%c0_12, %c0_13] : memref<8x128xf32, #tpu.memory_space<vmem>>, vector<8x128xf32>
    tpu.vector_store %arg6[%c0_12, %c0_13], %35 {strides = array<i32>} : memref<8x128xf32, #tpu.memory_space<vmem>>, vector<8x128xf32>,
    %c0_14 = arith.constant 0 : index
    %c0_15 = arith.constant 0 : index
    %37 = vector.load %arg7[%c0_14, %c0_15] : memref<8x128xf32, #tpu.memory_space<vmem>>, vector<8x128xf32>
    tpu.vector_store %arg7[%c0_14, %c0_15], %33 {strides = array<i32>} : memref<8x128xf32, #tpu.memory_space<vmem>>, vector<8x128xf32>,
    %38 = arith.index_cast %c0_i32_1 : i32 to index
    %c0_16 = arith.constant 0 : index
    %c0_17 = arith.constant 0 : index
    %39 = vector.load %arg3[%38, %c0_16, %c0_17] : memref<8x8x128xf32, #tpu.memory_space<vmem>>, vector<1x8x128xf32>
    %40 = vector.shape_cast %39 : vector<1x8x128xf32> to vector<8x128xf32>
    %41 = vector.shape_cast %35 : vector<8x128xf32> to vector<1x8x128xf32>
    tpu.vector_store %arg3[%38, %c0_16, %c0_17], %41 {strides = array<i32>} : memref<8x8x128xf32, #tpu.memory_space<vmem>>, vector<1x8x128xf32>,
    %c1_i32 = arith.constant 1 : i32
    %c0_18 = arith.constant 0 : index
    %c0_19 = arith.constant 0 : index
    %42 = vector.load %arg6[%c0_18, %c0_19] : memref<8x128xf32, #tpu.memory_space<vmem>>, vector<8x128xf32>
    %c0_20 = arith.constant 0 : index
    %c0_21 = arith.constant 0 : index
    %43 = vector.load %arg7[%c0_20, %c0_21] : memref<8x128xf32, #tpu.memory_space<vmem>>, vector<8x128xf32>
    %44 = arith.index_cast %c1_i32 : i32 to index
    %c0_22 = arith.constant 0 : index
    %c0_23 = arith.constant 0 : index
    %45 = vector.load %arg1[%44, %c0_22, %c0_23] : memref<8x8x512xf32, #tpu.memory_space<vmem>>, vector<1x8x512xf32>
    %46 = vector.shape_cast %45 : vector<1x8x512xf32> to vector<8x512xf32>
    %c0_24 = arith.constant 0 : index
    %c0_25 = arith.constant 0 : index
    %47 = vector.load %arg2[%c0_24, %c0_25] : memref<128x512xf32, #tpu.memory_space<vmem>>, vector<128x512xf32>
    %cst_26 = arith.constant dense<0.000000e+00> : vector<8x512xf32>
    %48 = tpu.matmul %42, %47, %cst_26 {dimension_numbers = #tpu.dot_dimension_numbers<[1], [0], [0], [1], [0, 0, 1, 1], [], []>} : vector<8x128xf32>, vector<128x512xf32>, vector<8x512xf32> -> vector<8x512xf32>
    %49 = arith.addf %46, %48 : vector<8x512xf32>
    %50 = vector.extract_strided_slice %49 {offsets = [0, 0], sizes = [8, 128], strides = [1, 1]} : vector<8x512xf32> to vector<8x128xf32>
    %51 = arith.negf %50 : vector<8x128xf32>
    %52 = math.exp %51 : vector<8x128xf32>
    %cst_27 = arith.constant 1.000000e+00 : f32
    %53 = vector.broadcast %cst_27 : f32 to vector<8x128xf32>
    %54 = arith.addf %53, %52 : vector<8x128xf32>
    %55 = arith.divf %53, %54 : vector<8x128xf32>
    %56 = vector.extract_strided_slice %49 {offsets = [0, 128], sizes = [8, 128], strides = [1, 1]} : vector<8x512xf32> to vector<8x128xf32>
    %57 = arith.negf %56 : vector<8x128xf32>
    %58 = math.exp %57 : vector<8x128xf32>
    %cst_28 = arith.constant 1.000000e+00 : f32
    %59 = vector.broadcast %cst_28 : f32 to vector<8x128xf32>
    %60 = arith.addf %59, %58 : vector<8x128xf32>
    %61 = arith.divf %59, %60 : vector<8x128xf32>
    %62 = vector.extract_strided_slice %49 {offsets = [0, 256], sizes = [8, 128], strides = [1, 1]} : vector<8x512xf32> to vector<8x128xf32>
    %63 = math.tanh %62 : vector<8x128xf32>
    %64 = vector.extract_strided_slice %49 {offsets = [0, 384], sizes = [8, 128], strides = [1, 1]} : vector<8x512xf32> to vector<8x128xf32>
    %65 = arith.negf %64 : vector<8x128xf32>
    %66 = math.exp %65 : vector<8x128xf32>
    %cst_29 = arith.constant 1.000000e+00 : f32
    %67 = vector.broadcast %cst_29 : f32 to vector<8x128xf32>
    %68 = arith.addf %67, %66 : vector<8x128xf32>
    %69 = arith.divf %67, %68 : vector<8x128xf32>
    %70 = arith.mulf %61, %43 : vector<8x128xf32>
    %71 = arith.mulf %55, %63 : vector<8x128xf32>
    %72 = arith.addf %70, %71 : vector<8x128xf32>
    %73 = math.tanh %72 : vector<8x128xf32>
    %74 = arith.mulf %69, %73 : vector<8x128xf32>
    %c0_30 = arith.constant 0 : index
    %c0_31 = arith.constant 0 : index
    %75 = vector.load %arg6[%c0_30, %c0_31] : memref<8x128xf32, #tpu.memory_space<vmem>>, vector<8x128xf32>
    tpu.vector_store %arg6[%c0_30, %c0_31], %74 {strides = array<i32>} : memref<8x128xf32, #tpu.memory_space<vmem>>, vector<8x128xf32>,
    %c0_32 = arith.constant 0 : index
    %c0_33 = arith.constant 0 : index
    %76 = vector.load %arg7[%c0_32, %c0_33] : memref<8x128xf32, #tpu.memory_space<vmem>>, vector<8x128xf32>
    tpu.vector_store %arg7[%c0_32, %c0_33], %72 {strides = array<i32>} : memref<8x128xf32, #tpu.memory_space<vmem>>, vector<8x128xf32>,
    %77 = arith.index_cast %c1_i32 : i32 to index
    %c0_34 = arith.constant 0 : index
    %c0_35 = arith.constant 0 : index
    %78 = vector.load %arg3[%77, %c0_34, %c0_35] : memref<8x8x128xf32, #tpu.memory_space<vmem>>, vector<1x8x128xf32>
    %79 = vector.shape_cast %78 : vector<1x8x128xf32> to vector<8x128xf32>
    %80 = vector.shape_cast %74 : vector<8x128xf32> to vector<1x8x128xf32>
    tpu.vector_store %arg3[%77, %c0_34, %c0_35], %80 {strides = array<i32>} : memref<8x8x128xf32, #tpu.memory_space<vmem>>, vector<1x8x128xf32>,
    %c2_i32 = arith.constant 2 : i32
    %c0_36 = arith.constant 0 : index
    %c0_37 = arith.constant 0 : index
    %81 = vector.load %arg6[%c0_36, %c0_37] : memref<8x128xf32, #tpu.memory_space<vmem>>, vector<8x128xf32>
    %c0_38 = arith.constant 0 : index
    %c0_39 = arith.constant 0 : index
    %82 = vector.load %arg7[%c0_38, %c0_39] : memref<8x128xf32, #tpu.memory_space<vmem>>, vector<8x128xf32>
    %83 = arith.index_cast %c2_i32 : i32 to index
    %c0_40 = arith.constant 0 : index
    %c0_41 = arith.constant 0 : index
    %84 = vector.load %arg1[%83, %c0_40, %c0_41] : memref<8x8x512xf32, #tpu.memory_space<vmem>>, vector<1x8x512xf32>
    %85 = vector.shape_cast %84 : vector<1x8x512xf32> to vector<8x512xf32>
    %c0_42 = arith.constant 0 : index
    %c0_43 = arith.constant 0 : index
    %86 = vector.load %arg2[%c0_42, %c0_43] : memref<128x512xf32, #tpu.memory_space<vmem>>, vector<128x512xf32>
    %cst_44 = arith.constant dense<0.000000e+00> : vector<8x512xf32>
    %87 = tpu.matmul %81, %86, %cst_44 {dimension_numbers = #tpu.dot_dimension_numbers<[1], [0], [0], [1], [0, 0, 1, 1], [], []>} : vector<8x128xf32>, vector<128x512xf32>, vector<8x512xf32> -> vector<8x512xf32>
    %88 = arith.addf %85, %87 : vector<8x512xf32>
    %89 = vector.extract_strided_slice %88 {offsets = [0, 0], sizes = [8, 128], strides = [1, 1]} : vector<8x512xf32> to vector<8x128xf32>
    %90 = arith.negf %89 : vector<8x128xf32>
    %91 = math.exp %90 : vector<8x128xf32>
    %cst_45 = arith.constant 1.000000e+00 : f32
    %92 = vector.broadcast %cst_45 : f32 to vector<8x128xf32>
    %93 = arith.addf %92, %91 : vector<8x128xf32>
    %94 = arith.divf %92, %93 : vector<8x128xf32>
    %95 = vector.extract_strided_slice %88 {offsets = [0, 128], sizes = [8, 128], strides = [1, 1]} : vector<8x512xf32> to vector<8x128xf32>
    %96 = arith.negf %95 : vector<8x128xf32>
    %97 = math.exp %96 : vector<8x128xf32>
    %cst_46 = arith.constant 1.000000e+00 : f32
    %98 = vector.broadcast %cst_46 : f32 to vector<8x128xf32>
    %99 = arith.addf %98, %97 : vector<8x128xf32>
    %100 = arith.divf %98, %99 : vector<8x128xf32>
    %101 = vector.extract_strided_slice %88 {offsets = [0, 256], sizes = [8, 128], strides = [1, 1]} : vector<8x512xf32> to vector<8x128xf32>
    %102 = math.tanh %101 : vector<8x128xf32>
    %103 = vector.extract_strided_slice %88 {offsets = [0, 384], sizes = [8, 128], strides = [1, 1]} : vector<8x512xf32> to vector<8x128xf32>
    %104 = arith.negf %103 : vector<8x128xf32>
    %105 = math.exp %104 : vector<8x128xf32>
    %cst_47 = arith.constant 1.000000e+00 : f32
    %106 = vector.broadcast %cst_47 : f32 to vector<8x128xf32>
    %107 = arith.addf %106, %105 : vector<8x128xf32>
    %108 = arith.divf %106, %107 : vector<8x128xf32>
    %109 = arith.mulf %100, %82 : vector<8x128xf32>
    %110 = arith.mulf %94, %102 : vector<8x128xf32>
    %111 = arith.addf %109, %110 : vector<8x128xf32>
    %112 = math.tanh %111 : vector<8x128xf32>
    %113 = arith.mulf %108, %112 : vector<8x128xf32>
    %c0_48 = arith.constant 0 : index
    %c0_49 = arith.constant 0 : index
    %114 = vector.load %arg6[%c0_48, %c0_49] : memref<8x128xf32, #tpu.memory_space<vmem>>, vector<8x128xf32>
    tpu.vector_store %arg6[%c0_48, %c0_49], %113 {strides = array<i32>} : memref<8x128xf32, #tpu.memory_space<vmem>>, vector<8x128xf32>,
    %c0_50 = arith.constant 0 : index
    %c0_51 = arith.constant 0 : index
    %115 = vector.load %arg7[%c0_50, %c0_51] : memref<8x128xf32, #tpu.memory_space<vmem>>, vector<8x128xf32>
    tpu.vector_store %arg7[%c0_50, %c0_51], %111 {strides = array<i32>} : memref<8x128xf32, #tpu.memory_space<vmem>>, vector<8x128xf32>,
    %116 = arith.index_cast %c2_i32 : i32 to index
    %c0_52 = arith.constant 0 : index
    %c0_53 = arith.constant 0 : index
    %117 = vector.load %arg3[%116, %c0_52, %c0_53] : memref<8x8x128xf32, #tpu.memory_space<vmem>>, vector<1x8x128xf32>
    %118 = vector.shape_cast %117 : vector<1x8x128xf32> to vector<8x128xf32>
    %119 = vector.shape_cast %113 : vector<8x128xf32> to vector<1x8x128xf32>
    tpu.vector_store %arg3[%116, %c0_52, %c0_53], %119 {strides = array<i32>} : memref<8x8x128xf32, #tpu.memory_space<vmem>>, vector<1x8x128xf32>,
    %c3_i32 = arith.constant 3 : i32
    %c0_54 = arith.constant 0 : index
    %c0_55 = arith.constant 0 : index
    %120 = vector.load %arg6[%c0_54, %c0_55] : memref<8x128xf32, #tpu.memory_space<vmem>>, vector<8x128xf32>
    %c0_56 = arith.constant 0 : index
    %c0_57 = arith.constant 0 : index
    %121 = vector.load %arg7[%c0_56, %c0_57] : memref<8x128xf32, #tpu.memory_space<vmem>>, vector<8x128xf32>
    %122 = arith.index_cast %c3_i32 : i32 to index
    %c0_58 = arith.constant 0 : index
    %c0_59 = arith.constant 0 : index
    %123 = vector.load %arg1[%122, %c0_58, %c0_59] : memref<8x8x512xf32, #tpu.memory_space<vmem>>, vector<1x8x512xf32>
    %124 = vector.shape_cast %123 : vector<1x8x512xf32> to vector<8x512xf32>
    %c0_60 = arith.constant 0 : index
    %c0_61 = arith.constant 0 : index
    %125 = vector.load %arg2[%c0_60, %c0_61] : memref<128x512xf32, #tpu.memory_space<vmem>>, vector<128x512xf32>
    %cst_62 = arith.constant dense<0.000000e+00> : vector<8x512xf32>
    %126 = tpu.matmul %120, %125, %cst_62 {dimension_numbers = #tpu.dot_dimension_numbers<[1], [0], [0], [1], [0, 0, 1, 1], [], []>} : vector<8x128xf32>, vector<128x512xf32>, vector<8x512xf32> -> vector<8x512xf32>
    %127 = arith.addf %124, %126 : vector<8x512xf32>
    %128 = vector.extract_strided_slice %127 {offsets = [0, 0], sizes = [8, 128], strides = [1, 1]} : vector<8x512xf32> to vector<8x128xf32>
    %129 = arith.negf %128 : vector<8x128xf32>
    %130 = math.exp %129 : vector<8x128xf32>
    %cst_63 = arith.constant 1.000000e+00 : f32
    %131 = vector.broadcast %cst_63 : f32 to vector<8x128xf32>
    %132 = arith.addf %131, %130 : vector<8x128xf32>
    %133 = arith.divf %131, %132 : vector<8x128xf32>
    %134 = vector.extract_strided_slice %127 {offsets = [0, 128], sizes = [8, 128], strides = [1, 1]} : vector<8x512xf32> to vector<8x128xf32>
    %135 = arith.negf %134 : vector<8x128xf32>
    %136 = math.exp %135 : vector<8x128xf32>
    %cst_64 = arith.constant 1.000000e+00 : f32
    %137 = vector.broadcast %cst_64 : f32 to vector<8x128xf32>
    %138 = arith.addf %137, %136 : vector<8x128xf32>
    %139 = arith.divf %137, %138 : vector<8x128xf32>
    %140 = vector.extract_strided_slice %127 {offsets = [0, 256], sizes = [8, 128], strides = [1, 1]} : vector<8x512xf32> to vector<8x128xf32>
    %141 = math.tanh %140 : vector<8x128xf32>
    %142 = vector.extract_strided_slice %127 {offsets = [0, 384], sizes = [8, 128], strides = [1, 1]} : vector<8x512xf32> to vector<8x128xf32>
    %143 = arith.negf %142 : vector<8x128xf32>
    %144 = math.exp %143 : vector<8x128xf32>
    %cst_65 = arith.constant 1.000000e+00 : f32
    %145 = vector.broadcast %cst_65 : f32 to vector<8x128xf32>
    %146 = arith.addf %145, %144 : vector<8x128xf32>
    %147 = arith.divf %145, %146 : vector<8x128xf32>
    %148 = arith.mulf %139, %121 : vector<8x128xf32>
    %149 = arith.mulf %133, %141 : vector<8x128xf32>
    %150 = arith.addf %148, %149 : vector<8x128xf32>
    %151 = math.tanh %150 : vector<8x128xf32>
    %152 = arith.mulf %147, %151 : vector<8x128xf32>
    %c0_66 = arith.constant 0 : index
    %c0_67 = arith.constant 0 : index
    %153 = vector.load %arg6[%c0_66, %c0_67] : memref<8x128xf32, #tpu.memory_space<vmem>>, vector<8x128xf32>
    tpu.vector_store %arg6[%c0_66, %c0_67], %152 {strides = array<i32>} : memref<8x128xf32, #tpu.memory_space<vmem>>, vector<8x128xf32>,
    %c0_68 = arith.constant 0 : index
    %c0_69 = arith.constant 0 : index
    %154 = vector.load %arg7[%c0_68, %c0_69] : memref<8x128xf32, #tpu.memory_space<vmem>>, vector<8x128xf32>
    tpu.vector_store %arg7[%c0_68, %c0_69], %150 {strides = array<i32>} : memref<8x128xf32, #tpu.memory_space<vmem>>, vector<8x128xf32>,
    %155 = arith.index_cast %c3_i32 : i32 to index
    %c0_70 = arith.constant 0 : index
    %c0_71 = arith.constant 0 : index
    %156 = vector.load %arg3[%155, %c0_70, %c0_71] : memref<8x8x128xf32, #tpu.memory_space<vmem>>, vector<1x8x128xf32>
    %157 = vector.shape_cast %156 : vector<1x8x128xf32> to vector<8x128xf32>
    %158 = vector.shape_cast %152 : vector<8x128xf32> to vector<1x8x128xf32>
    tpu.vector_store %arg3[%155, %c0_70, %c0_71], %158 {strides = array<i32>} : memref<8x8x128xf32, #tpu.memory_space<vmem>>, vector<1x8x128xf32>,
    %c4_i32 = arith.constant 4 : i32
    %c0_72 = arith.constant 0 : index
    %c0_73 = arith.constant 0 : index
    %159 = vector.load %arg6[%c0_72, %c0_73] : memref<8x128xf32, #tpu.memory_space<vmem>>, vector<8x128xf32>
    %c0_74 = arith.constant 0 : index
    %c0_75 = arith.constant 0 : index
    %160 = vector.load %arg7[%c0_74, %c0_75] : memref<8x128xf32, #tpu.memory_space<vmem>>, vector<8x128xf32>
    %161 = arith.index_cast %c4_i32 : i32 to index
    %c0_76 = arith.constant 0 : index
    %c0_77 = arith.constant 0 : index
    %162 = vector.load %arg1[%161, %c0_76, %c0_77] : memref<8x8x512xf32, #tpu.memory_space<vmem>>, vector<1x8x512xf32>
    %163 = vector.shape_cast %162 : vector<1x8x512xf32> to vector<8x512xf32>
    %c0_78 = arith.constant 0 : index
    %c0_79 = arith.constant 0 : index
    %164 = vector.load %arg2[%c0_78, %c0_79] : memref<128x512xf32, #tpu.memory_space<vmem>>, vector<128x512xf32>
    %cst_80 = arith.constant dense<0.000000e+00> : vector<8x512xf32>
    %165 = tpu.matmul %159, %164, %cst_80 {dimension_numbers = #tpu.dot_dimension_numbers<[1], [0], [0], [1], [0, 0, 1, 1], [], []>} : vector<8x128xf32>, vector<128x512xf32>, vector<8x512xf32> -> vector<8x512xf32>
    %166 = arith.addf %163, %165 : vector<8x512xf32>
    %167 = vector.extract_strided_slice %166 {offsets = [0, 0], sizes = [8, 128], strides = [1, 1]} : vector<8x512xf32> to vector<8x128xf32>
    %168 = arith.negf %167 : vector<8x128xf32>
    %169 = math.exp %168 : vector<8x128xf32>
    %cst_81 = arith.constant 1.000000e+00 : f32
    %170 = vector.broadcast %cst_81 : f32 to vector<8x128xf32>
    %171 = arith.addf %170, %169 : vector<8x128xf32>
    %172 = arith.divf %170, %171 : vector<8x128xf32>
    %173 = vector.extract_strided_slice %166 {offsets = [0, 128], sizes = [8, 128], strides = [1, 1]} : vector<8x512xf32> to vector<8x128xf32>
    %174 = arith.negf %173 : vector<8x128xf32>
    %175 = math.exp %174 : vector<8x128xf32>
    %cst_82 = arith.constant 1.000000e+00 : f32
    %176 = vector.broadcast %cst_82 : f32 to vector<8x128xf32>
    %177 = arith.addf %176, %175 : vector<8x128xf32>
    %178 = arith.divf %176, %177 : vector<8x128xf32>
    %179 = vector.extract_strided_slice %166 {offsets = [0, 256], sizes = [8, 128], strides = [1, 1]} : vector<8x512xf32> to vector<8x128xf32>
    %180 = math.tanh %179 : vector<8x128xf32>
    %181 = vector.extract_strided_slice %166 {offsets = [0, 384], sizes = [8, 128], strides = [1, 1]} : vector<8x512xf32> to vector<8x128xf32>
    %182 = arith.negf %181 : vector<8x128xf32>
    %183 = math.exp %182 : vector<8x128xf32>
    %cst_83 = arith.constant 1.000000e+00 : f32
    %184 = vector.broadcast %cst_83 : f32 to vector<8x128xf32>
    %185 = arith.addf %184, %183 : vector<8x128xf32>
    %186 = arith.divf %184, %185 : vector<8x128xf32>
    %187 = arith.mulf %178, %160 : vector<8x128xf32>
    %188 = arith.mulf %172, %180 : vector<8x128xf32>
    %189 = arith.addf %187, %188 : vector<8x128xf32>
    %190 = math.tanh %189 : vector<8x128xf32>
    %191 = arith.mulf %186, %190 : vector<8x128xf32>
    %c0_84 = arith.constant 0 : index
    %c0_85 = arith.constant 0 : index
    %192 = vector.load %arg6[%c0_84, %c0_85] : memref<8x128xf32, #tpu.memory_space<vmem>>, vector<8x128xf32>
    tpu.vector_store %arg6[%c0_84, %c0_85], %191 {strides = array<i32>} : memref<8x128xf32, #tpu.memory_space<vmem>>, vector<8x128xf32>,
    %c0_86 = arith.constant 0 : index
    %c0_87 = arith.constant 0 : index
    %193 = vector.load %arg7[%c0_86, %c0_87] : memref<8x128xf32, #tpu.memory_space<vmem>>, vector<8x128xf32>
    tpu.vector_store %arg7[%c0_86, %c0_87], %189 {strides = array<i32>} : memref<8x128xf32, #tpu.memory_space<vmem>>, vector<8x128xf32>,
    %194 = arith.index_cast %c4_i32 : i32 to index
    %c0_88 = arith.constant 0 : index
    %c0_89 = arith.constant 0 : index
    %195 = vector.load %arg3[%194, %c0_88, %c0_89] : memref<8x8x128xf32, #tpu.memory_space<vmem>>, vector<1x8x128xf32>
    %196 = vector.shape_cast %195 : vector<1x8x128xf32> to vector<8x128xf32>
    %197 = vector.shape_cast %191 : vector<8x128xf32> to vector<1x8x128xf32>
    tpu.vector_store %arg3[%194, %c0_88, %c0_89], %197 {strides = array<i32>} : memref<8x8x128xf32, #tpu.memory_space<vmem>>, vector<1x8x128xf32>,
    %c5_i32 = arith.constant 5 : i32
    %c0_90 = arith.constant 0 : index
    %c0_91 = arith.constant 0 : index
    %198 = vector.load %arg6[%c0_90, %c0_91] : memref<8x128xf32, #tpu.memory_space<vmem>>, vector<8x128xf32>
    %c0_92 = arith.constant 0 : index
    %c0_93 = arith.constant 0 : index
    %199 = vector.load %arg7[%c0_92, %c0_93] : memref<8x128xf32, #tpu.memory_space<vmem>>, vector<8x128xf32>
    %200 = arith.index_cast %c5_i32 : i32 to index
    %c0_94 = arith.constant 0 : index
    %c0_95 = arith.constant 0 : index
    %201 = vector.load %arg1[%200, %c0_94, %c0_95] : memref<8x8x512xf32, #tpu.memory_space<vmem>>, vector<1x8x512xf32>
    %202 = vector.shape_cast %201 : vector<1x8x512xf32> to vector<8x512xf32>
    %c0_96 = arith.constant 0 : index
    %c0_97 = arith.constant 0 : index
    %203 = vector.load %arg2[%c0_96, %c0_97] : memref<128x512xf32, #tpu.memory_space<vmem>>, vector<128x512xf32>
    %cst_98 = arith.constant dense<0.000000e+00> : vector<8x512xf32>
    %204 = tpu.matmul %198, %203, %cst_98 {dimension_numbers = #tpu.dot_dimension_numbers<[1], [0], [0], [1], [0, 0, 1, 1], [], []>} : vector<8x128xf32>, vector<128x512xf32>, vector<8x512xf32> -> vector<8x512xf32>
    %205 = arith.addf %202, %204 : vector<8x512xf32>
    %206 = vector.extract_strided_slice %205 {offsets = [0, 0], sizes = [8, 128], strides = [1, 1]} : vector<8x512xf32> to vector<8x128xf32>
    %207 = arith.negf %206 : vector<8x128xf32>
    %208 = math.exp %207 : vector<8x128xf32>
    %cst_99 = arith.constant 1.000000e+00 : f32
    %209 = vector.broadcast %cst_99 : f32 to vector<8x128xf32>
    %210 = arith.addf %209, %208 : vector<8x128xf32>
    %211 = arith.divf %209, %210 : vector<8x128xf32>
    %212 = vector.extract_strided_slice %205 {offsets = [0, 128], sizes = [8, 128], strides = [1, 1]} : vector<8x512xf32> to vector<8x128xf32>
    %213 = arith.negf %212 : vector<8x128xf32>
    %214 = math.exp %213 : vector<8x128xf32>
    %cst_100 = arith.constant 1.000000e+00 : f32
    %215 = vector.broadcast %cst_100 : f32 to vector<8x128xf32>
    %216 = arith.addf %215, %214 : vector<8x128xf32>
    %217 = arith.divf %215, %216 : vector<8x128xf32>
    %218 = vector.extract_strided_slice %205 {offsets = [0, 256], sizes = [8, 128], strides = [1, 1]} : vector<8x512xf32> to vector<8x128xf32>
    %219 = math.tanh %218 : vector<8x128xf32>
    %220 = vector.extract_strided_slice %205 {offsets = [0, 384], sizes = [8, 128], strides = [1, 1]} : vector<8x512xf32> to vector<8x128xf32>
    %221 = arith.negf %220 : vector<8x128xf32>
    %222 = math.exp %221 : vector<8x128xf32>
    %cst_101 = arith.constant 1.000000e+00 : f32
    %223 = vector.broadcast %cst_101 : f32 to vector<8x128xf32>
    %224 = arith.addf %223, %222 : vector<8x128xf32>
    %225 = arith.divf %223, %224 : vector<8x128xf32>
    %226 = arith.mulf %217, %199 : vector<8x128xf32>
    %227 = arith.mulf %211, %219 : vector<8x128xf32>
    %228 = arith.addf %226, %227 : vector<8x128xf32>
    %229 = math.tanh %228 : vector<8x128xf32>
    %230 = arith.mulf %225, %229 : vector<8x128xf32>
    %c0_102 = arith.constant 0 : index
    %c0_103 = arith.constant 0 : index
    %231 = vector.load %arg6[%c0_102, %c0_103] : memref<8x128xf32, #tpu.memory_space<vmem>>, vector<8x128xf32>
    tpu.vector_store %arg6[%c0_102, %c0_103], %230 {strides = array<i32>} : memref<8x128xf32, #tpu.memory_space<vmem>>, vector<8x128xf32>,
    %c0_104 = arith.constant 0 : index
    %c0_105 = arith.constant 0 : index
    %232 = vector.load %arg7[%c0_104, %c0_105] : memref<8x128xf32, #tpu.memory_space<vmem>>, vector<8x128xf32>
    tpu.vector_store %arg7[%c0_104, %c0_105], %228 {strides = array<i32>} : memref<8x128xf32, #tpu.memory_space<vmem>>, vector<8x128xf32>,
    %233 = arith.index_cast %c5_i32 : i32 to index
    %c0_106 = arith.constant 0 : index
    %c0_107 = arith.constant 0 : index
    %234 = vector.load %arg3[%233, %c0_106, %c0_107] : memref<8x8x128xf32, #tpu.memory_space<vmem>>, vector<1x8x128xf32>
    %235 = vector.shape_cast %234 : vector<1x8x128xf32> to vector<8x128xf32>
    %236 = vector.shape_cast %230 : vector<8x128xf32> to vector<1x8x128xf32>
    tpu.vector_store %arg3[%233, %c0_106, %c0_107], %236 {strides = array<i32>} : memref<8x8x128xf32, #tpu.memory_space<vmem>>, vector<1x8x128xf32>,
    %c6_i32 = arith.constant 6 : i32
    %c0_108 = arith.constant 0 : index
    %c0_109 = arith.constant 0 : index
    %237 = vector.load %arg6[%c0_108, %c0_109] : memref<8x128xf32, #tpu.memory_space<vmem>>, vector<8x128xf32>
    %c0_110 = arith.constant 0 : index
    %c0_111 = arith.constant 0 : index
    %238 = vector.load %arg7[%c0_110, %c0_111] : memref<8x128xf32, #tpu.memory_space<vmem>>, vector<8x128xf32>
    %239 = arith.index_cast %c6_i32 : i32 to index
    %c0_112 = arith.constant 0 : index
    %c0_113 = arith.constant 0 : index
    %240 = vector.load %arg1[%239, %c0_112, %c0_113] : memref<8x8x512xf32, #tpu.memory_space<vmem>>, vector<1x8x512xf32>
    %241 = vector.shape_cast %240 : vector<1x8x512xf32> to vector<8x512xf32>
    %c0_114 = arith.constant 0 : index
    %c0_115 = arith.constant 0 : index
    %242 = vector.load %arg2[%c0_114, %c0_115] : memref<128x512xf32, #tpu.memory_space<vmem>>, vector<128x512xf32>
    %cst_116 = arith.constant dense<0.000000e+00> : vector<8x512xf32>
    %243 = tpu.matmul %237, %242, %cst_116 {dimension_numbers = #tpu.dot_dimension_numbers<[1], [0], [0], [1], [0, 0, 1, 1], [], []>} : vector<8x128xf32>, vector<128x512xf32>, vector<8x512xf32> -> vector<8x512xf32>
    %244 = arith.addf %241, %243 : vector<8x512xf32>
    %245 = vector.extract_strided_slice %244 {offsets = [0, 0], sizes = [8, 128], strides = [1, 1]} : vector<8x512xf32> to vector<8x128xf32>
    %246 = arith.negf %245 : vector<8x128xf32>
    %247 = math.exp %246 : vector<8x128xf32>
    %cst_117 = arith.constant 1.000000e+00 : f32
    %248 = vector.broadcast %cst_117 : f32 to vector<8x128xf32>
    %249 = arith.addf %248, %247 : vector<8x128xf32>
    %250 = arith.divf %248, %249 : vector<8x128xf32>
    %251 = vector.extract_strided_slice %244 {offsets = [0, 128], sizes = [8, 128], strides = [1, 1]} : vector<8x512xf32> to vector<8x128xf32>
    %252 = arith.negf %251 : vector<8x128xf32>
    %253 = math.exp %252 : vector<8x128xf32>
    %cst_118 = arith.constant 1.000000e+00 : f32
    %254 = vector.broadcast %cst_118 : f32 to vector<8x128xf32>
    %255 = arith.addf %254, %253 : vector<8x128xf32>
    %256 = arith.divf %254, %255 : vector<8x128xf32>
    %257 = vector.extract_strided_slice %244 {offsets = [0, 256], sizes = [8, 128], strides = [1, 1]} : vector<8x512xf32> to vector<8x128xf32>
    %258 = math.tanh %257 : vector<8x128xf32>
    %259 = vector.extract_strided_slice %244 {offsets = [0, 384], sizes = [8, 128], strides = [1, 1]} : vector<8x512xf32> to vector<8x128xf32>
    %260 = arith.negf %259 : vector<8x128xf32>
    %261 = math.exp %260 : vector<8x128xf32>
    %cst_119 = arith.constant 1.000000e+00 : f32
    %262 = vector.broadcast %cst_119 : f32 to vector<8x128xf32>
    %263 = arith.addf %262, %261 : vector<8x128xf32>
    %264 = arith.divf %262, %263 : vector<8x128xf32>
    %265 = arith.mulf %256, %238 : vector<8x128xf32>
    %266 = arith.mulf %250, %258 : vector<8x128xf32>
    %267 = arith.addf %265, %266 : vector<8x128xf32>
    %268 = math.tanh %267 : vector<8x128xf32>
    %269 = arith.mulf %264, %268 : vector<8x128xf32>
    %c0_120 = arith.constant 0 : index
    %c0_121 = arith.constant 0 : index
    %270 = vector.load %arg6[%c0_120, %c0_121] : memref<8x128xf32, #tpu.memory_space<vmem>>, vector<8x128xf32>
    tpu.vector_store %arg6[%c0_120, %c0_121], %269 {strides = array<i32>} : memref<8x128xf32, #tpu.memory_space<vmem>>, vector<8x128xf32>,
    %c0_122 = arith.constant 0 : index
    %c0_123 = arith.constant 0 : index
    %271 = vector.load %arg7[%c0_122, %c0_123] : memref<8x128xf32, #tpu.memory_space<vmem>>, vector<8x128xf32>
    tpu.vector_store %arg7[%c0_122, %c0_123], %267 {strides = array<i32>} : memref<8x128xf32, #tpu.memory_space<vmem>>, vector<8x128xf32>,
    %272 = arith.index_cast %c6_i32 : i32 to index
    %c0_124 = arith.constant 0 : index
    %c0_125 = arith.constant 0 : index
    %273 = vector.load %arg3[%272, %c0_124, %c0_125] : memref<8x8x128xf32, #tpu.memory_space<vmem>>, vector<1x8x128xf32>
    %274 = vector.shape_cast %273 : vector<1x8x128xf32> to vector<8x128xf32>
    %275 = vector.shape_cast %269 : vector<8x128xf32> to vector<1x8x128xf32>
    tpu.vector_store %arg3[%272, %c0_124, %c0_125], %275 {strides = array<i32>} : memref<8x8x128xf32, #tpu.memory_space<vmem>>, vector<1x8x128xf32>,
    %c7_i32 = arith.constant 7 : i32
    %c0_126 = arith.constant 0 : index
    %c0_127 = arith.constant 0 : index
    %276 = vector.load %arg6[%c0_126, %c0_127] : memref<8x128xf32, #tpu.memory_space<vmem>>, vector<8x128xf32>
    %c0_128 = arith.constant 0 : index
    %c0_129 = arith.constant 0 : index
    %277 = vector.load %arg7[%c0_128, %c0_129] : memref<8x128xf32, #tpu.memory_space<vmem>>, vector<8x128xf32>
    %278 = arith.index_cast %c7_i32 : i32 to index
    %c0_130 = arith.constant 0 : index
    %c0_131 = arith.constant 0 : index
    %279 = vector.load %arg1[%278, %c0_130, %c0_131] : memref<8x8x512xf32, #tpu.memory_space<vmem>>, vector<1x8x512xf32>
    %280 = vector.shape_cast %279 : vector<1x8x512xf32> to vector<8x512xf32>
    %c0_132 = arith.constant 0 : index
    %c0_133 = arith.constant 0 : index
    %281 = vector.load %arg2[%c0_132, %c0_133] : memref<128x512xf32, #tpu.memory_space<vmem>>, vector<128x512xf32>
    %cst_134 = arith.constant dense<0.000000e+00> : vector<8x512xf32>
    %282 = tpu.matmul %276, %281, %cst_134 {dimension_numbers = #tpu.dot_dimension_numbers<[1], [0], [0], [1], [0, 0, 1, 1], [], []>} : vector<8x128xf32>, vector<128x512xf32>, vector<8x512xf32> -> vector<8x512xf32>
    %283 = arith.addf %280, %282 : vector<8x512xf32>
    %284 = vector.extract_strided_slice %283 {offsets = [0, 0], sizes = [8, 128], strides = [1, 1]} : vector<8x512xf32> to vector<8x128xf32>
    %285 = arith.negf %284 : vector<8x128xf32>
    %286 = math.exp %285 : vector<8x128xf32>
    %cst_135 = arith.constant 1.000000e+00 : f32
    %287 = vector.broadcast %cst_135 : f32 to vector<8x128xf32>
    %288 = arith.addf %287, %286 : vector<8x128xf32>
    %289 = arith.divf %287, %288 : vector<8x128xf32>
    %290 = vector.extract_strided_slice %283 {offsets = [0, 128], sizes = [8, 128], strides = [1, 1]} : vector<8x512xf32> to vector<8x128xf32>
    %291 = arith.negf %290 : vector<8x128xf32>
    %292 = math.exp %291 : vector<8x128xf32>
    %cst_136 = arith.constant 1.000000e+00 : f32
    %293 = vector.broadcast %cst_136 : f32 to vector<8x128xf32>
    %294 = arith.addf %293, %292 : vector<8x128xf32>
    %295 = arith.divf %293, %294 : vector<8x128xf32>
    %296 = vector.extract_strided_slice %283 {offsets = [0, 256], sizes = [8, 128], strides = [1, 1]} : vector<8x512xf32> to vector<8x128xf32>
    %297 = math.tanh %296 : vector<8x128xf32>
    %298 = vector.extract_strided_slice %283 {offsets = [0, 384], sizes = [8, 128], strides = [1, 1]} : vector<8x512xf32> to vector<8x128xf32>
    %299 = arith.negf %298 : vector<8x128xf32>
    %300 = math.exp %299 : vector<8x128xf32>
    %cst_137 = arith.constant 1.000000e+00 : f32
    %301 = vector.broadcast %cst_137 : f32 to vector<8x128xf32>
    %302 = arith.addf %301, %300 : vector<8x128xf32>
    %303 = arith.divf %301, %302 : vector<8x128xf32>
    %304 = arith.mulf %295, %277 : vector<8x128xf32>
    %305 = arith.mulf %289, %297 : vector<8x128xf32>
    %306 = arith.addf %304, %305 : vector<8x128xf32>
    %307 = math.tanh %306 : vector<8x128xf32>
    %308 = arith.mulf %303, %307 : vector<8x128xf32>
    %c0_138 = arith.constant 0 : index
    %c0_139 = arith.constant 0 : index
    %309 = vector.load %arg6[%c0_138, %c0_139] : memref<8x128xf32, #tpu.memory_space<vmem>>, vector<8x128xf32>
    tpu.vector_store %arg6[%c0_138, %c0_139], %308 {strides = array<i32>} : memref<8x128xf32, #tpu.memory_space<vmem>>, vector<8x128xf32>,
    %c0_140 = arith.constant 0 : index
    %c0_141 = arith.constant 0 : index
    %310 = vector.load %arg7[%c0_140, %c0_141] : memref<8x128xf32, #tpu.memory_space<vmem>>, vector<8x128xf32>
    tpu.vector_store %arg7[%c0_140, %c0_141], %306 {strides = array<i32>} : memref<8x128xf32, #tpu.memory_space<vmem>>, vector<8x128xf32>,
    %311 = arith.index_cast %c7_i32 : i32 to index
    %c0_142 = arith.constant 0 : index
    %c0_143 = arith.constant 0 : index
    %312 = vector.load %arg3[%311, %c0_142, %c0_143] : memref<8x8x128xf32, #tpu.memory_space<vmem>>, vector<1x8x128xf32>
    %313 = vector.shape_cast %312 : vector<1x8x128xf32> to vector<8x128xf32>
    %314 = vector.shape_cast %308 : vector<8x128xf32> to vector<1x8x128xf32>
    tpu.vector_store %arg3[%311, %c0_142, %c0_143], %314 {strides = array<i32>} : memref<8x8x128xf32, #tpu.memory_space<vmem>>, vector<1x8x128xf32>,
    %c8_i32 = arith.constant 8 : i32
    %c0_i32_144 = arith.constant 0 : i32
    %315 = arith.cmpi eq, %arg0, %c0_i32_144 : i32
    %316 = arith.extui %315 : i1 to i32
    %c0_i32_145 = arith.constant 0 : i32
    %317 = arith.cmpi ne, %316, %c0_i32_145 : i32
    scf.if %317 {
      %c0_146 = arith.constant 0 : index
      %c0_147 = arith.constant 0 : index
      %318 = vector.load %arg6[%c0_146, %c0_147] : memref<8x128xf32, #tpu.memory_space<vmem>>, vector<8x128xf32>
      %c0_148 = arith.constant 0 : index
      %c0_149 = arith.constant 0 : index
      %319 = vector.load %arg4[%c0_148, %c0_149] : memref<8x128xf32, #tpu.memory_space<vmem>>, vector<8x128xf32>
      tpu.vector_store %arg4[%c0_148, %c0_149], %318 {strides = array<i32>} : memref<8x128xf32, #tpu.memory_space<vmem>>, vector<8x128xf32>,
      %c0_150 = arith.constant 0 : index
      %c0_151 = arith.constant 0 : index
      %320 = vector.load %arg7[%c0_150, %c0_151] : memref<8x128xf32, #tpu.memory_space<vmem>>, vector<8x128xf32>
      %c0_152 = arith.constant 0 : index
      %c0_153 = arith.constant 0 : index
      %321 = vector.load %arg5[%c0_152, %c0_153] : memref<8x128xf32, #tpu.memory_space<vmem>>, vector<8x128xf32>
      tpu.vector_store %arg5[%c0_152, %c0_153], %320 {strides = array<i32>} : memref<8x128xf32, #tpu.memory_space<vmem>>, vector<8x128xf32>,
    } else {
    }
    return
  }
  func.func @transform_0(%arg0: i32) -> (i32, i32, i32) {
    %c0_i32 = arith.constant 0 : i32
    %c0_i32_0 = arith.constant 0 : i32
    %c0_i32_1 = arith.constant 0 : i32
    return %arg0, %c0_i32, %c0_i32_0 : i32, i32, i32
  }
  func.func @transform_1(%arg0: i32) -> (i32, i32) {
    %c0_i32 = arith.constant 0 : i32
    %c0_i32_0 = arith.constant 0 : i32
    %c0_i32_1 = arith.constant 0 : i32
    return %c0_i32, %c0_i32_0 : i32, i32
  }
  func.func @transform_2(%arg0: i32) -> (i32, i32, i32) {
    %c0_i32 = arith.constant 0 : i32
    %c0_i32_0 = arith.constant 0 : i32
    %c0_i32_1 = arith.constant 0 : i32
    return %arg0, %c0_i32, %c0_i32_0 : i32, i32, i32
  }
  func.func @transform_3(%arg0: i32) -> (i32, i32) {
    %c0_i32 = arith.constant 0 : i32
    %c0_i32_0 = arith.constant 0 : i32
    %c0_i32_1 = arith.constant 0 : i32
    return %c0_i32, %c0_i32_0 : i32, i32
  }
  func.func @transform_4(%arg0: i32) -> (i32, i32) {
    %c0_i32 = arith.constant 0 : i32
    %c0_i32_0 = arith.constant 0 : i32
    %c0_i32_1 = arith.constant 0 : i32
    return %c0_i32, %c0_i32_0 : i32, i32
  }
}

</mosaic_0001>

<bundles_post_ra>
// kernel: lstm_forward.1
= control target key start
LH: loop header
LB: loop body
LE: loop exit
PB: predicated region body
PF: predicated region fallthrough
CT: control target
= control target key end

     0   :  { %v2697_v3 = vmov 0.0   ;;  %s3709_s1 = inlined_call_operand.vmem [shape: f32[128,512], index: 1, kind: input, shape index: {}]   ;;  %s3710_s0 = inlined_call_operand.vmem [shape: f32[8,8,512], index: 0, kind: input, shape index: {}]   ;;  %s3711_s2 = inlined_call_operand.vmem [shape: f32[8,8,128], index: 2, kind: output, shape index: {0}]   ;;  %s3712_s4 = inlined_call_operand.vmem [shape: f32[8,128], index: 4, kind: output, shape index: {2}]   ;;  %s3713_s3 = inlined_call_operand.vmem [shape: f32[8,128], index: 3, kind: output, shape index: {1}]  }
   0x1   :  { %v27_v0 = vld [vmem:[%s3709_s1 + $0x8] sm:$0xff]  ;;  %v26_v2 = vld [vmem:[%s3709_s1] sm:$0xff]  ;;  %154 = vmatprep.mubr.f32.mxu0 %v2697_v3  ;;  %225 = vmatprep.mubr.f32.mxu1 %v2697_v3  ;;  %v29_v19 = vld [vmem:[%s3709_s1 + $0x18] sm:$0xff] }
   0x2   :  { %v31_v1 = vld [vmem:[%s3709_s1 + $0x28] sm:$0xff]  ;;  %v30_v5 = vld [vmem:[%s3709_s1 + $0x20] sm:$0xff]  ;;  %v33_v20 = vld [vmem:[%s3709_s1 + $0x38] sm:$0xff] }
   0x3   :  { %v2734_v4 = vpack.c.bf16 %v31_v1, %v27_v0  ;;  %v35_v6 = vld [vmem:[%s3709_s1 + $0x48] sm:$0xff]  ;;  %v2745_v8 = vpack.c.bf16 %v30_v5, %v26_v2  ;;  %v34_v10 = vld [vmem:[%s3709_s1 + $0x40] sm:$0xff]  ;;  %v2786_v22 = vpack.c.bf16 %v33_v20, %v29_v19  ;;  %v28_v23 = vld [vmem:[%s3709_s1 + $0x10] sm:$0xff] }
   0x4   :  { %v39_v7 = vld [vmem:[%s3709_s1 + $0x68] sm:$0xff]  ;;  %v38_v11 = vld [vmem:[%s3709_s1 + $0x60] sm:$0xff]  ;;  %v32_v24 = vld [vmem:[%s3709_s1 + $0x30] sm:$0xff] }
   0x5   :  { %v2747_v9 = vpack.c.bf16 %v39_v7, %v35_v6  ;;  %v43_v12 = vld [vmem:[%s3709_s1 + $0x88] sm:$0xff]  ;;  %2057 = vmatprep.subr.bf16.mxu0 %v2734_v4  ;;  %v2763_v14 = vpack.c.bf16 %v38_v11, %v34_v10  ;;  %v42_v15 = vld [vmem:[%s3709_s1 + $0x80] sm:$0xff]  ;;  %v2794_v25 = vpack.c.bf16 %v32_v24, %v28_v23  ;;  %2089 = vmatprep.subr.bf16.mxu1 %v2786_v22  ;;  %v37_v27 = vld [vmem:[%s3709_s1 + $0x58] sm:$0xff] }
   0x6   :  { %v47_v13 = vld [vmem:[%s3709_s1 + $0xa8] sm:$0xff]  ;;  %2059 = vmatpush1.bf16.msra.mxu0 %v2745_v8  ;;  %v46_v16 = vld [vmem:[%s3709_s1 + $0xa0] sm:$0xff]  ;;  %v41_v28 = vld [vmem:[%s3709_s1 + $0x78] sm:$0xff] }
   0x7   :  { %2061 = vmatprep.subr.bf16.mxu0 %v2747_v9  ;;  %v2772_v17 = vpack.c.bf16 %v47_v13, %v43_v12  ;;  %v51_v18 = vld [vmem:[%s3709_s1 + $0xc8] sm:$0xff]  ;;  %v2797_v26 = vpack.c.bf16 %v46_v16, %v42_v15  ;;  %v36_v29 = vld [vmem:[%s3709_s1 + $0x50] sm:$0xff]  ;;  %v50_v31 = vld [vmem:[%s3709_s1 + $0xc0] sm:$0xff]  ;;  %2091 = vmatpush1.bf16.msra.mxu1 %v2794_v25  ;;  %v2819_v33 = vpack.c.bf16 %v41_v28, %v37_v27 }
   0x8   :  { %v55_v21 = vld [vmem:[%s3709_s1 + $0xe8] sm:$0xff]  ;;  %v54_v32 = vld [vmem:[%s3709_s1 + $0xe0] sm:$0xff]  ;;  %v40_v34 = vld [vmem:[%s3709_s1 + $0x70] sm:$0xff] }
   0x9   :  { %v2810_v30 = vpack.c.bf16 %v55_v21, %v51_v18  ;;  %v59_v35 = vld [vmem:[%s3709_s1 + $0x108] sm:$0xff]  ;;  %v2830_v37 = vpack.c.bf16 %v40_v34, %v36_v29  ;;  %v45_v38 = vld [vmem:[%s3709_s1 + $0x98] sm:$0xff]  ;;  %2093 = vmatprep.subr.bf16.mxu1 %v2819_v33  ;;  %v44_v40 = vld [vmem:[%s3709_s1 + $0x90] sm:$0xff]  ;;  %v2846_v42 = vpack.c.bf16 %v54_v32, %v50_v31 }
   0xa   :  { %2063 = vmatpush1.bf16.msra.mxu0 %v2763_v14  ;;  %v63_v36 = vld [vmem:[%s3709_s1 + $0x128] sm:$0xff]  ;;  %v49_v39 = vld [vmem:[%s3709_s1 + $0xb8] sm:$0xff]  ;;  %v48_v41 = vld [vmem:[%s3709_s1 + $0xb0] sm:$0xff] }
   0xb   :  { %2065 = vmatprep.subr.bf16.mxu0 %v2772_v17  ;;  %v58_v43 = vld [vmem:[%s3709_s1 + $0x100] sm:$0xff]  ;;  %v2854_v45 = vpack.c.bf16 %v49_v39, %v45_v38  ;;  %v2857_v46 = vpack.c.bf16 %v63_v36, %v59_v35  ;;  %2095 = vmatpush1.bf16.msra.mxu1 %v2830_v37  ;;  %v67_v47 = vld [vmem:[%s3709_s1 + $0x148] sm:$0xff]  ;;  %v2863_v48 = vpack.c.bf16 %v48_v41, %v44_v40  ;;  %v53_v49 = vld [vmem:[%s3709_s1 + $0xd8] sm:$0xff] }
   0xc   :  { %v62_v44 = vld [vmem:[%s3709_s1 + $0x120] sm:$0xff]  ;;  %v57_v50 = vld [vmem:[%s3709_s1 + $0xf8] sm:$0xff]  ;;  %v71_v51 = vld [vmem:[%s3709_s1 + $0x168] sm:$0xff] }
   0xd   :  { %2097 = vmatprep.subr.bf16.mxu1 %v2854_v45  ;;  %v2875_v52 = vpack.c.bf16 %v57_v50, %v53_v49  ;;  %v52_v53 = vld [vmem:[%s3709_s1 + $0xd0] sm:$0xff]  ;;  %v2884_v55 = vpack.c.bf16 %v62_v44, %v58_v43  ;;  %v61_v56 = vld [vmem:[%s3709_s1 + $0x118] sm:$0xff]  ;;  %v2893_v58 = vpack.c.bf16 %v71_v51, %v67_v47  ;;  %v66_v59 = vld [vmem:[%s3709_s1 + $0x140] sm:$0xff] }
   0xe   :  { %2067 = vmatpush1.bf16.msra.mxu0 %v2797_v26  ;;  %v56_v54 = vld [vmem:[%s3709_s1 + $0xf0] sm:$0xff]  ;;  %v65_v57 = vld [vmem:[%s3709_s1 + $0x138] sm:$0xff]  ;;  %v70_v60 = vld [vmem:[%s3709_s1 + $0x160] sm:$0xff] }
   0xf   :  { %2069 = vmatprep.subr.bf16.mxu0 %v2810_v30  ;;  %2099 = vmatpush1.bf16.msra.mxu1 %v2863_v48  ;;  %v75_v61 = vld [vmem:[%s3709_s1 + $0x188] sm:$0xff]  ;;  %v2905_v62 = vpack.c.bf16 %v56_v54, %v52_v53  ;;  %v2911_v0 = vpack.c.bf16 %v65_v57, %v61_v56  ;;  %v60_v1 = vld [vmem:[%s3709_s1 + $0x110] sm:$0xff]  ;;  %v69_v5 = vld [vmem:[%s3709_s1 + $0x158] sm:$0xff]  ;;  %v2926_v7 = vpack.c.bf16 %v70_v60, %v66_v59 }
  0x10   :  { %v79_v63 = vld [vmem:[%s3709_s1 + $0x1a8] sm:$0xff]  ;;  %2101 = vmatprep.subr.bf16.mxu1 %v2875_v52  ;;  %v64_v2 = vld [vmem:[%s3709_s1 + $0x130] sm:$0xff]  ;;  %v73_v6 = vld [vmem:[%s3709_s1 + $0x178] sm:$0xff] }
  0x11   :  { %v2929_v10 = vpack.c.bf16 %v79_v63, %v75_v61  ;;  %v74_v11 = vld [vmem:[%s3709_s1 + $0x180] sm:$0xff]  ;;  %v83_v13 = vld [vmem:[%s3709_s1 + $0x1c8] sm:$0xff]  ;;  %v2941_v15 = vpack.c.bf16 %v64_v2, %v60_v1  ;;  %v2947_v18 = vpack.c.bf16 %v73_v6, %v69_v5  ;;  %v68_v19 = vld [vmem:[%s3709_s1 + $0x150] sm:$0xff] }
  0x12   :  { %2071 = vmatpush1.bf16.msra.mxu0 %v2846_v42  ;;  %v78_v12 = vld [vmem:[%s3709_s1 + $0x1a0] sm:$0xff]  ;;  %v87_v16 = vld [vmem:[%s3709_s1 + $0x1e8] sm:$0xff]  ;;  %v72_v20 = vld [vmem:[%s3709_s1 + $0x170] sm:$0xff] }
  0x13   :  { %2073 = vmatprep.subr.bf16.mxu0 %v2857_v46  ;;  %2103 = vmatpush1.bf16.msra.mxu1 %v2905_v62  ;;  %v77_v21 = vld [vmem:[%s3709_s1 + $0x198] sm:$0xff]  ;;  %v2962_v24 = vpack.c.bf16 %v78_v12, %v74_v11  ;;  %v2965_v27 = vpack.c.bf16 %v87_v16, %v83_v13  ;;  %v82_v28 = vld [vmem:[%s3709_s1 + $0x1c0] sm:$0xff]  ;;  %v2974_v31 = vpack.c.bf16 %v72_v20, %v68_v19  ;;  %v76_v34 = vld [vmem:[%s3709_s1 + $0x190] sm:$0xff] }
  0x14   :  { %2105 = vmatprep.subr.bf16.mxu1 %v2911_v0  ;;  %v81_v23 = vld [vmem:[%s3709_s1 + $0x1b8] sm:$0xff]  ;;  %v86_v29 = vld [vmem:[%s3709_s1 + $0x1e0] sm:$0xff]  ;;  %v80_v35 = vld [vmem:[%s3709_s1 + $0x1b0] sm:$0xff] }
  0x15   :  { %v2977_v32 = vpack.c.bf16 %v81_v23, %v77_v21  ;;  %v85_v36 = vld [vmem:[%s3709_s1 + $0x1d8] sm:$0xff]  ;;  %v2992_v39 = vpack.c.bf16 %v86_v29, %v82_v28  ;;  %v2996_v40 = vpack.c.bf16 %v80_v35, %v76_v34  ;;  %v84_v43 = vld [vmem:[%s3709_s1 + $0x1d0] sm:$0xff]  ;;  %v22_v49 = vld [vmem:[%s3710_s0] sm:$0xff] }
  0x16   :  { %2075 = vmatpush1.bf16.msra.mxu0 %v2884_v55  ;;  %v89_v38 = vld [vmem:[%s3709_s1 + $0x1f8] sm:$0xff]  ;;  %v88_v44 = vld [vmem:[%s3709_s1 + $0x1f0] sm:$0xff]  ;;  %v23_v50 = vld [vmem:[%s3710_s0 + $0x8] sm:$0xff] }
  0x17   :  { %2077 = vmatprep.subr.bf16.mxu0 %v2893_v58  ;;  %2107 = vmatpush1.bf16.msra.mxu1 %v2941_v15  ;;  %v2999_v41 = vpack.c.bf16 %v89_v38, %v85_v36  ;;  %v3009_v47 = vpack.c.bf16 %v88_v44, %v84_v43  ;;  %v25_v60 = vld [vmem:[%s3710_s0 + $0x18] sm:$0xff]  ;;  %v24_v2 = vld [vmem:[%s3710_s0 + $0x10] sm:$0xff] }
  0x18   :  { %2109 = vmatprep.subr.bf16.mxu1 %v2947_v18  ;;  %v2002_v44 = vld [vmem:[%s3710_s0 + $0x30] sm:$0xff] }
  0x1a   :  { %2079 = vmatpush1.bf16.msra.mxu0 %v2926_v7 }
  0x1b   :  { %2081 = vmatprep.subr.bf16.mxu0 %v2929_v10  ;;  %2111 = vmatpush1.bf16.msra.mxu1 %v2974_v31 }
  0x1c   :  { %2113 = vmatprep.subr.bf16.mxu1 %v2977_v32 }
  0x1e   :  { %2083 = vmatpush1.bf16.msra.mxu0 %v2962_v24 }
  0x1f   :  { %2085 = vmatprep.subr.bf16.mxu0 %v2965_v27  ;;  %2115 = vmatpush1.bf16.msra.mxu1 %v2996_v40 }
  0x20   :  { %2117 = vmatprep.subr.bf16.mxu1 %v2999_v41 }
  0x22   :  { %2087 = vmatpush1.bf16.msra.mxu0 %v2992_v39 }
  0x23   :  { %2121 = vmatprep.subr.bf16.mxu0 %v2734_v4  ;;  %2119 = vmatpush1.bf16.msra.mxu1 %v3009_v47 }
  0x24   :  { %2153 = vmatprep.subr.bf16.mxu1 %v2786_v22 }
  0x25   :  { %155 = vmatmul.mubr.f32.vlgmr.msra.gmra.mrb[0].mxu0 %v2697_v3 }
  0x26   :  { %2123 = vmatpush1.bf16.msra.mxu0 %v2745_v8  ;;  %398 = vmatprep.mubr.f32.mxu0 %v2697_v3 }
  0x27   :  { %2125 = vmatprep.subr.bf16.mxu0 %v2747_v9  ;;  %226 = vmatmul.mubr.f32.vlgmr.msra.gmra.mrb[0].mxu1 %v2697_v3 }
  0x28   :  { %2155 = vmatpush1.bf16.msra.mxu1 %v2794_v25  ;;  %469 = vmatprep.mubr.f32.mxu1 %v2697_v3 }
  0x29   :  { %2157 = vmatprep.subr.bf16.mxu1 %v2819_v33 }
  0x2a   :  { %2127 = vmatpush1.bf16.msra.mxu0 %v2763_v14 }
  0x2b   :  { %2129 = vmatprep.subr.bf16.mxu0 %v2772_v17 }
  0x2c   :  { %2159 = vmatpush1.bf16.msra.mxu1 %v2830_v37 }
  0x2d   :  { %2161 = vmatprep.subr.bf16.mxu1 %v2854_v45 }
  0x2e   :  { %2131 = vmatpush1.bf16.msra.mxu0 %v2797_v26 }
  0x2f   :  { %2133 = vmatprep.subr.bf16.mxu0 %v2810_v30 }
  0x30   :  { %2163 = vmatpush1.bf16.msra.mxu1 %v2863_v48 }
  0x31   :  { %2165 = vmatprep.subr.bf16.mxu1 %v2875_v52 }
  0x32   :  { %2135 = vmatpush1.bf16.msra.mxu0 %v2846_v42 }
  0x33   :  { %2137 = vmatprep.subr.bf16.mxu0 %v2857_v46 }
  0x34   :  { %2167 = vmatpush1.bf16.msra.mxu1 %v2905_v62 }
  0x35   :  { %2169 = vmatprep.subr.bf16.mxu1 %v2911_v0 }
  0x36   :  { %2139 = vmatpush1.bf16.msra.mxu0 %v2884_v55 }
  0x37   :  { %2141 = vmatprep.subr.bf16.mxu0 %v2893_v58 }
  0x38   :  { %2171 = vmatpush1.bf16.msra.mxu1 %v2941_v15 }
  0x39   :  { %2173 = vmatprep.subr.bf16.mxu1 %v2947_v18 }
  0x3a   :  { %2143 = vmatpush1.bf16.msra.mxu0 %v2926_v7 }
  0x3b   :  { %2145 = vmatprep.subr.bf16.mxu0 %v2929_v10 }
  0x3c   :  { %2175 = vmatpush1.bf16.msra.mxu1 %v2974_v31 }
  0x3d   :  { %2177 = vmatprep.subr.bf16.mxu1 %v2977_v32 }
  0x3e   :  { %2147 = vmatpush1.bf16.msra.mxu0 %v2962_v24 }
  0x3f   :  { %2149 = vmatprep.subr.bf16.mxu0 %v2965_v27 }
  0x40   :  { %2179 = vmatpush1.bf16.msra.mxu1 %v2996_v40 }
  0x41   :  { %2181 = vmatprep.subr.bf16.mxu1 %v2999_v41 }
  0x42   :  { %2151 = vmatpush1.bf16.msra.mxu0 %v2992_v39 }
  0x43   :  { %2185 = vmatprep.subr.bf16.mxu0 %v2734_v4 }
  0x44   :  { %2183 = vmatpush1.bf16.msra.mxu1 %v3009_v47 }
  0x45   :  { %2217 = vmatprep.subr.bf16.mxu1 %v2786_v22 }
  0xf8   :  { %v156_v51 = vpop.f32.mrb[0].mxu0 }
  0xf9   :  { %v232_v53 = vadd.f32 %v156_v51, %v22_v49  ;;  %v158_v54 = vpop.f32.mrb[1].mxu0 }
  0xfa   :  { %v233_v56 = vadd.f32 %v158_v54, %v23_v50  ;;  %v227_v61 = vpop.f32.mrb[0].mxu1 }
  0xfb   :  { %v1997_v57 = vmul.f32 -1.442695, %v232_v53  ;;  %v229_v63 = vpop.f32.mrb[1].mxu1  ;;  %v234_v6 = vadd.f32 %v227_v61, %v24_v2 }
  0xfc   :  { %v1998_v59 = vmul.f32 -1.442695, %v233_v56  ;;  %v235_v1 = vadd.f32 %v229_v63, %v25_v60 }
  0xfd   :  { %2569 = vpow2.f32 %v1997_v57 }
  0xfe   :  { %2571 = vpow2.f32 %v1998_v59  ;;  %v1999_v5 = vmul.f32 -1.442695, %v235_v1 }
 0x100   :  { %2573 = vpow2.f32 %v1999_v5 }
 0x101   :  { %2575 = vtanh.f32 %v234_v6 }
 0x107   :  { %v2570_v11 = vpop.eup %2569 }
 0x108   :  { %v2572_v12 = vpop.eup %2571  ;;  %v239_v13 = vadd.f32 1.0, %v2570_v11 }
 0x109   :  { %v245_v16 = vadd.f32 1.0, %v2572_v12 }
 0x10a   :  { %2577 = vrcp.f32 %v239_v13  ;;  %v2574_v19 = vpop.eup %2573 }
 0x10b   :  { %2579 = vrcp.f32 %v245_v16  ;;  %v2576_v20 = vpop.eup %2575  ;;  %v252_v23 = vadd.f32 1.0, %v2574_v19  ;;  %v808_v16 = vld [vmem:[%s3709_s1 + $0x180] sm:$0xff] }
 0x10c   :  { %v812_v19 = vld [vmem:[%s3709_s1 + $0x1a0] sm:$0xff] }
 0x10d   :  { %2581 = vrcp.f32 %v252_v23  ;;  %v3218_v23 = vpack.c.bf16 %v812_v19, %v808_v16  ;;  %v1013_v16 = vld [vmem:[%s3709_s1 + $0x40] sm:$0xff] }
 0x10e   :  { %v1017_v19 = vld [vmem:[%s3709_s1 + $0x60] sm:$0xff] }
 0x114   :  { %v2578_v21 = vpop.eup %2577 }
 0x115   :  { %v2580_v28 = vpop.eup %2579  ;;  %v256_v29 = vmul.f32 %v2578_v21, %v2576_v20  ;;  %v817_v20 = vld [vmem:[%s3709_s1 + $0x1c8] sm:$0xff] }
 0x116   :  { %v255_v34 = vmul.f32 0.0, %v2580_v28  ;;  %v821_v21 = vld [vmem:[%s3709_s1 + $0x1e8] sm:$0xff] }
 0x117   :  { %v2582_v36 = vpop.eup %2581  ;;  %v3221_v28 = vpack.c.bf16 %v821_v21, %v817_v20  ;;  %v3313_v21 = vpack.c.bf16 %v1017_v19, %v1013_v16  ;;  %v1067_v16 = vld [vmem:[%s3709_s1 + $0x1f0] sm:$0xff] }
 0x118   :  { %v3063_v35 = vadd.f32 %v256_v29, %v255_v34  ;;  %v816_v29 = vld [vmem:[%s3709_s1 + $0x1c0] sm:$0xff] }
 0x119   :  { %v820_v34 = vld [vmem:[%s3709_s1 + $0x1e0] sm:$0xff] }
 0x11a   :  { %2583 = vtanh.f32 %v3063_v35 }
 0x124   :  { %v2584_v38 = vpop.eup %2583 }
 0x125   :  { %v259_v43 = vmul.f32 %v2584_v38, %v2582_v36  ;;  %v2008_v36 = vld [vmem:[%s3710_s0 + $0x40] sm:$0xff]  ;;  %v2009_v38 = vld [vmem:[%s3710_s0 + $0x48] sm:$0xff] }
 0x127   :  { %262 = vst [vmem:[%s3711_s2] sm:$0xff] %v259_v43  ;;  %399 = vmatmul.mubr.f32.vlgmr.msra.gmra.mrb[2].mxu0 %v259_v43  ;;  %470 = vmatmul.mubr.f32.vlgmr.msra.gmra.mrb[2].mxu1 %v259_v43 }
 0x128   :  { %2187 = vmatpush1.bf16.msra.mxu0 %v2745_v8  ;;  %2219 = vmatpush1.bf16.msra.mxu1 %v2794_v25 }
 0x129   :  { %2189 = vmatprep.subr.bf16.mxu0 %v2747_v9  ;;  %2221 = vmatprep.subr.bf16.mxu1 %v2819_v33 }
 0x12a   :  { %643 = vmatprep.mubr.f32.mxu0 %v2697_v3  ;;  %714 = vmatprep.mubr.f32.mxu1 %v2697_v3 }
 0x12c   :  { %2191 = vmatpush1.bf16.msra.mxu0 %v2763_v14  ;;  %2223 = vmatpush1.bf16.msra.mxu1 %v2830_v37 }
 0x12d   :  { %2193 = vmatprep.subr.bf16.mxu0 %v2772_v17  ;;  %2225 = vmatprep.subr.bf16.mxu1 %v2854_v45 }
 0x130   :  { %2195 = vmatpush1.bf16.msra.mxu0 %v2797_v26  ;;  %2227 = vmatpush1.bf16.msra.mxu1 %v2863_v48 }
 0x131   :  { %2197 = vmatprep.subr.bf16.mxu0 %v2810_v30  ;;  %2229 = vmatprep.subr.bf16.mxu1 %v2875_v52  ;;  %v2000_v30 = vld [vmem:[%s3710_s0 + $0x20] sm:$0xff] }
 0x134   :  { %2199 = vmatpush1.bf16.msra.mxu0 %v2846_v42  ;;  %2231 = vmatpush1.bf16.msra.mxu1 %v2905_v62  ;;  %v2001_v42 = vld [vmem:[%s3710_s0 + $0x28] sm:$0xff] }
 0x135   :  { %2201 = vmatprep.subr.bf16.mxu0 %v2857_v46  ;;  %2233 = vmatprep.subr.bf16.mxu1 %v2911_v0 }
 0x138   :  { %2203 = vmatpush1.bf16.msra.mxu0 %v2884_v55  ;;  %2235 = vmatpush1.bf16.msra.mxu1 %v2941_v15 }
 0x139   :  { %2205 = vmatprep.subr.bf16.mxu0 %v2893_v58  ;;  %2237 = vmatprep.subr.bf16.mxu1 %v2947_v18 }
 0x13c   :  { %2207 = vmatpush1.bf16.msra.mxu0 %v2926_v7  ;;  %2239 = vmatpush1.bf16.msra.mxu1 %v2974_v31 }
 0x13d   :  { %2209 = vmatprep.subr.bf16.mxu0 %v2929_v10  ;;  %2241 = vmatprep.subr.bf16.mxu1 %v2977_v32 }
 0x140   :  { %2211 = vmatpush1.bf16.msra.mxu0 %v2962_v24  ;;  %2243 = vmatpush1.bf16.msra.mxu1 %v2996_v40 }
 0x141   :  { %2213 = vmatprep.subr.bf16.mxu0 %v2965_v27  ;;  %2245 = vmatprep.subr.bf16.mxu1 %v2999_v41 }
 0x144   :  { %2215 = vmatpush1.bf16.msra.mxu0 %v2992_v39  ;;  %2247 = vmatpush1.bf16.msra.mxu1 %v3009_v47 }
 0x145   :  { %2249 = vmatprep.subr.bf16.mxu0 %v2734_v4  ;;  %2281 = vmatprep.subr.bf16.mxu1 %v2786_v22  ;;  %v2003_v4 = vld [vmem:[%s3710_s0 + $0x38] sm:$0xff] }
 0x1fa   :  { %v400_v46 = vpop.f32.mrb[2].mxu0  ;;  %v471_v55 = vpop.f32.mrb[2].mxu1 }
 0x1fb   :  { %v476_v58 = vadd.f32 %v2000_v30, %v400_v46  ;;  %v402_v7 = vpop.f32.mrb[3].mxu0  ;;  %v473_v10 = vpop.f32.mrb[3].mxu1  ;;  %v478_v50 = vadd.f32 %v2002_v44, %v471_v55 }
 0x1fc   :  { %v477_v24 = vadd.f32 %v2001_v42, %v402_v7  ;;  %v479_v22 = vadd.f32 %v2003_v4, %v473_v10 }
 0x1fd   :  { %v2004_v27 = vmul.f32 -1.442695, %v476_v58 }
 0x1fe   :  { %v2005_v39 = vmul.f32 -1.442695, %v477_v24  ;;  %v2006_v49 = vmul.f32 -1.442695, %v479_v22  ;;  %v2011_v24 = vld [vmem:[%s3710_s0 + $0x58] sm:$0xff] }
 0x1ff   :  { %2585 = vpow2.f32 %v2004_v27 }
 0x200   :  { %2587 = vpow2.f32 %v2005_v39  ;;  %v2010_v39 = vld [vmem:[%s3710_s0 + $0x50] sm:$0xff] }
 0x201   :  { %2589 = vpow2.f32 %v2006_v49 }
 0x202   :  { %2591 = vtanh.f32 %v478_v50 }
 0x209   :  { %v2586_v51 = vpop.eup %2585 }
 0x20a   :  { %v2588_v53 = vpop.eup %2587  ;;  %v483_v54 = vadd.f32 1.0, %v2586_v51 }
 0x20b   :  { %v489_v56 = vadd.f32 1.0, %v2588_v53  ;;  %v2590_v57 = vpop.eup %2589 }
 0x20c   :  { %2593 = vrcp.f32 %v483_v54  ;;  %v2592_v59 = vpop.eup %2591  ;;  %v496_v1 = vadd.f32 1.0, %v2590_v57 }
 0x20d   :  { %2595 = vrcp.f32 %v489_v56 }
 0x20e   :  { %2597 = vrcp.f32 %v496_v1 }
 0x216   :  { %v2594_v60 = vpop.eup %2593 }
 0x217   :  { %v2596_v61 = vpop.eup %2595  ;;  %v500_v63 = vmul.f32 %v2594_v60, %v2592_v59 }
 0x218   :  { %v499_v2 = vmul.f32 %v2596_v61, %v3063_v35  ;;  %v2598_v6 = vpop.eup %2597  ;;  %v3230_v35 = vpack.c.bf16 %v820_v34, %v816_v29  ;;  %v1015_v29 = vld [vmem:[%s3709_s1 + $0x50] sm:$0xff] }
 0x219   :  { %v1019_v34 = vld [vmem:[%s3709_s1 + $0x70] sm:$0xff] }
 0x21a   :  { %v3116_v5 = vadd.f32 %v500_v63, %v499_v2 }
 0x21c   :  { %2599 = vtanh.f32 %v3116_v5 }
 0x226   :  { %v2600_v11 = vpop.eup %2599 }
 0x227   :  { %v503_v12 = vmul.f32 %v2600_v11, %v2598_v6  ;;  %v1010_v11 = vld [vmem:[%s3709_s1 + $0x28] sm:$0xff] }
 0x229   :  { %2007 = vst [vmem:[%s3711_s2 + $0x8] sm:$0xff] %v503_v12  ;;  %644 = vmatmul.mubr.f32.vlgmr.msra.gmra.mrb[4].mxu0 %v503_v12  ;;  %715 = vmatmul.mubr.f32.vlgmr.msra.gmra.mrb[4].mxu1 %v503_v12  ;;  %v1008_v12 = vld [vmem:[%s3709_s1 + $0x18] sm:$0xff] }
 0x22a   :  { %2251 = vmatpush1.bf16.msra.mxu0 %v2745_v8  ;;  %2283 = vmatpush1.bf16.msra.mxu1 %v2794_v25  ;;  %v785_v8 = vld [vmem:[%s3709_s1 + $0xc8] sm:$0xff]  ;;  %v788_v25 = vld [vmem:[%s3709_s1 + $0xe0] sm:$0xff] }
 0x22b   :  { %2253 = vmatprep.subr.bf16.mxu0 %v2747_v9  ;;  %2285 = vmatprep.subr.bf16.mxu1 %v2819_v33  ;;  %v789_v9 = vld [vmem:[%s3709_s1 + $0xe8] sm:$0xff] }
 0x22c   :  { %888 = vmatprep.mubr.f32.mxu0 %v2697_v3  ;;  %959 = vmatprep.mubr.f32.mxu1 %v2697_v3  ;;  %v793_v33 = vld [vmem:[%s3709_s1 + $0x108] sm:$0xff] }
 0x22e   :  { %2255 = vmatpush1.bf16.msra.mxu0 %v2763_v14  ;;  %2287 = vmatpush1.bf16.msra.mxu1 %v2830_v37  ;;  %v3150_v14 = vpack.c.bf16 %v789_v9, %v785_v8  ;;  %v797_v37 = vld [vmem:[%s3709_s1 + $0x128] sm:$0xff]  ;;  %v1012_v9 = vld [vmem:[%s3709_s1 + $0x38] sm:$0xff] }
 0x22f   :  { %2257 = vmatprep.subr.bf16.mxu0 %v2772_v17  ;;  %2289 = vmatprep.subr.bf16.mxu1 %v2854_v45  ;;  %v784_v17 = vld [vmem:[%s3709_s1 + $0xc0] sm:$0xff]  ;;  %v3168_v45 = vpack.c.bf16 %v797_v37, %v793_v33  ;;  %v3275_v33 = vpack.c.bf16 %v1012_v9, %v1008_v12  ;;  %v1060_v12 = vld [vmem:[%s3709_s1 + $0x1b8] sm:$0xff] }
 0x232   :  { %2259 = vmatpush1.bf16.msra.mxu0 %v2797_v26  ;;  %2291 = vmatpush1.bf16.msra.mxu1 %v2863_v48  ;;  %v3158_v26 = vpack.c.bf16 %v788_v25, %v784_v17  ;;  %v792_v48 = vld [vmem:[%s3709_s1 + $0x100] sm:$0xff] }
 0x233   :  { %2293 = vmatprep.subr.bf16.mxu1 %v2875_v52  ;;  %2261 = vmatprep.subr.bf16.mxu0 %v3150_v14  ;;  %v796_v52 = vld [vmem:[%s3709_s1 + $0x120] sm:$0xff] }
 0x234   :  { %v1005_v17 = vld [vmem:[%s3709_s1] sm:$0xff] }
 0x235   :  { %v1009_v25 = vld [vmem:[%s3709_s1 + $0x20] sm:$0xff] }
 0x236   :  { %2295 = vmatpush1.bf16.msra.mxu1 %v2905_v62  ;;  %2263 = vmatpush1.bf16.msra.mxu0 %v3158_v26  ;;  %v3176_v62 = vpack.c.bf16 %v796_v52, %v792_v48  ;;  %v3277_v37 = vpack.c.bf16 %v1009_v25, %v1005_v17  ;;  %v1007_v48 = vld [vmem:[%s3709_s1 + $0x10] sm:$0xff] }
 0x237   :  { %2297 = vmatprep.subr.bf16.mxu1 %v2911_v0  ;;  %2265 = vmatprep.subr.bf16.mxu0 %v3168_v45  ;;  %v801_v0 = vld [vmem:[%s3709_s1 + $0x148] sm:$0xff]  ;;  %v1011_v52 = vld [vmem:[%s3709_s1 + $0x30] sm:$0xff] }
 0x238   :  { %v1055_v25 = vld [vmem:[%s3709_s1 + $0x190] sm:$0xff] }
 0x23a   :  { %2299 = vmatpush1.bf16.msra.mxu1 %v2941_v15  ;;  %v805_v15 = vld [vmem:[%s3709_s1 + $0x168] sm:$0xff]  ;;  %2267 = vmatpush1.bf16.msra.mxu0 %v3176_v62 }
 0x23b   :  { %2301 = vmatprep.subr.bf16.mxu1 %v2947_v18  ;;  %v800_v18 = vld [vmem:[%s3709_s1 + $0x140] sm:$0xff] }
 0x23e   :  { %2303 = vmatpush1.bf16.msra.mxu1 %v2974_v31  ;;  %v3189_v31 = vpack.c.bf16 %v805_v15, %v801_v0  ;;  %v3286_v0 = vpack.c.bf16 %v1011_v52, %v1007_v48  ;;  %v1014_v15 = vld [vmem:[%s3709_s1 + $0x48] sm:$0xff]  ;;  %v1059_v48 = vld [vmem:[%s3709_s1 + $0x1b0] sm:$0xff]  ;;  %v1064_v52 = vld [vmem:[%s3709_s1 + $0x1d8] sm:$0xff] }
 0x23f   :  { %2305 = vmatprep.subr.bf16.mxu1 %v2977_v32  ;;  %v804_v32 = vld [vmem:[%s3709_s1 + $0x160] sm:$0xff] }
 0x240   :  { %2269 = vmatprep.subr.bf16.mxu0 %v3189_v31 }
 0x242   :  { %2307 = vmatpush1.bf16.msra.mxu1 %v2996_v40  ;;  %v809_v40 = vld [vmem:[%s3709_s1 + $0x188] sm:$0xff] }
 0x243   :  { %2309 = vmatprep.subr.bf16.mxu1 %v2999_v41  ;;  %v813_v41 = vld [vmem:[%s3709_s1 + $0x1a8] sm:$0xff] }
 0x244   :  { %v3202_v13 = vpack.c.bf16 %v813_v41, %v809_v40  ;;  %v1020_v41 = vld [vmem:[%s3709_s1 + $0x78] sm:$0xff] }
 0x246   :  { %2311 = vmatpush1.bf16.msra.mxu1 %v3009_v47  ;;  %v3200_v47 = vpack.c.bf16 %v804_v32, %v800_v18  ;;  %v1018_v18 = vld [vmem:[%s3709_s1 + $0x68] sm:$0xff]  ;;  %v1016_v32 = vld [vmem:[%s3709_s1 + $0x58] sm:$0xff] }
 0x247   :  { %2345 = vmatprep.subr.bf16.mxu1 %v3275_v33  ;;  %v3300_v40 = vpack.c.bf16 %v1018_v18, %v1014_v15  ;;  %v3311_v20 = vpack.c.bf16 %v1020_v41, %v1016_v32  ;;  %v1068_v15 = vld [vmem:[%s3709_s1 + $0x1f8] sm:$0xff]  ;;  %v3444_v18 = vpack.c.bf16 %v1059_v48, %v1055_v25  ;;  %v1063_v41 = vld [vmem:[%s3709_s1 + $0x1d0] sm:$0xff] }
 0x248   :  { %2271 = vmatpush1.bf16.msra.mxu0 %v3200_v47  ;;  %v3447_v32 = vpack.c.bf16 %v1068_v15, %v1064_v52  ;;  %v3458_v19 = vpack.c.bf16 %v1067_v16, %v1063_v41 }
 0x249   :  { %2273 = vmatprep.subr.bf16.mxu0 %v3202_v13 }
 0x24c   :  { %2275 = vmatpush1.bf16.msra.mxu0 %v3218_v23 }
 0x24d   :  { %2277 = vmatprep.subr.bf16.mxu0 %v3221_v28 }
 0x250   :  { %2279 = vmatpush1.bf16.msra.mxu0 %v3230_v35 }
 0x2fc   :  { %v645_v43 = vpop.f32.mrb[4].mxu0  ;;  %v716_v30 = vpop.f32.mrb[4].mxu1 }
 0x2fd   :  { %v721_v42 = vadd.f32 %v2008_v36, %v645_v43  ;;  %v647_v46 = vpop.f32.mrb[5].mxu0  ;;  %v718_v55 = vpop.f32.mrb[5].mxu1  ;;  %v723_v22 = vadd.f32 %v2010_v39, %v716_v30  ;;  %v3322_v36 = vpack.c.bf16 %v1019_v34, %v1015_v29  ;;  %v1026_v43 = vld [vmem:[%s3709_s1 + $0xa8] sm:$0xff]  ;;  %v1024_v30 = vld [vmem:[%s3709_s1 + $0x98] sm:$0xff]  ;;  %v2016_v29 = vld [vmem:[%s3710_s0 + $0x60] sm:$0xff] }
 0x2fe   :  { %v722_v58 = vadd.f32 %v2009_v38, %v647_v46  ;;  %v724_v27 = vadd.f32 %v2011_v24, %v718_v55  ;;  %v1022_v38 = vld [vmem:[%s3709_s1 + $0x88] sm:$0xff]  ;;  %v1028_v46 = vld [vmem:[%s3709_s1 + $0xb8] sm:$0xff]  ;;  %v1021_v55 = vld [vmem:[%s3709_s1 + $0x80] sm:$0xff] }
 0x2ff   :  { %v2012_v7 = vmul.f32 -1.442695, %v721_v42  ;;  %v3336_v42 = vpack.c.bf16 %v1026_v43, %v1022_v38  ;;  %v1023_v24 = vld [vmem:[%s3709_s1 + $0x90] sm:$0xff]  ;;  %v2017_v34 = vld [vmem:[%s3710_s0 + $0x68] sm:$0xff] }
 0x300   :  { %v2013_v10 = vmul.f32 -1.442695, %v722_v58  ;;  %v2014_v4 = vmul.f32 -1.442695, %v724_v27  ;;  %v1025_v58 = vld [vmem:[%s3709_s1 + $0xa0] sm:$0xff]  ;;  %v1027_v27 = vld [vmem:[%s3709_s1 + $0xb0] sm:$0xff] }
 0x301   :  { %2601 = vpow2.f32 %v2012_v7  ;;  %v3347_v7 = vpack.c.bf16 %v1028_v46, %v1024_v30  ;;  %v3358_v39 = vpack.c.bf16 %v1027_v27, %v1023_v24 }
 0x302   :  { %2603 = vpow2.f32 %v2013_v10  ;;  %v3349_v10 = vpack.c.bf16 %v1025_v58, %v1021_v55 }
 0x303   :  { %2605 = vpow2.f32 %v2014_v4  ;;  %v1032_v4 = vld [vmem:[%s3709_s1 + $0xd8] sm:$0xff] }
 0x304   :  { %2607 = vtanh.f32 %v723_v22  ;;  %v1036_v22 = vld [vmem:[%s3709_s1 + $0xf8] sm:$0xff] }
 0x30b   :  { %v2602_v44 = vpop.eup %2601 }
 0x30c   :  { %v2604_v49 = vpop.eup %2603  ;;  %v728_v50 = vadd.f32 1.0, %v2602_v44  ;;  %v3370_v44 = vpack.c.bf16 %v1036_v22, %v1032_v4  ;;  %v2019_v4 = vld [vmem:[%s3710_s0 + $0x78] sm:$0xff] }
 0x30d   :  { %v734_v51 = vadd.f32 1.0, %v2604_v49  ;;  %v2606_v53 = vpop.eup %2605  ;;  %v1031_v49 = vld [vmem:[%s3709_s1 + $0xd0] sm:$0xff] }
 0x30e   :  { %2609 = vrcp.f32 %v728_v50  ;;  %v2608_v54 = vpop.eup %2607  ;;  %v741_v60 = vadd.f32 1.0, %v2606_v53  ;;  %v1035_v50 = vld [vmem:[%s3709_s1 + $0xf0] sm:$0xff]  ;;  %v1040_v53 = vld [vmem:[%s3709_s1 + $0x118] sm:$0xff] }
 0x30f   :  { %2611 = vrcp.f32 %v734_v51  ;;  %v3378_v51 = vpack.c.bf16 %v1035_v50, %v1031_v49  ;;  %v2018_v49 = vld [vmem:[%s3710_s0 + $0x70] sm:$0xff] }
 0x310   :  { %2613 = vrcp.f32 %v741_v60 }
 0x318   :  { %v2610_v56 = vpop.eup %2609 }
 0x319   :  { %v2612_v57 = vpop.eup %2611  ;;  %v745_v59 = vmul.f32 %v2610_v56, %v2608_v54  ;;  %v1044_v54 = vld [vmem:[%s3709_s1 + $0x138] sm:$0xff] }
 0x31a   :  { %v744_v61 = vmul.f32 %v2612_v57, %v3116_v5  ;;  %v2614_v1 = vpop.eup %2613  ;;  %v1006_v5 = vld [vmem:[%s3709_s1 + $0x8] sm:$0xff]  ;;  %v3390_v56 = vpack.c.bf16 %v1044_v54, %v1040_v53  ;;  %v1039_v57 = vld [vmem:[%s3709_s1 + $0x110] sm:$0xff] }
 0x31b   :  { %v3264_v8 = vpack.c.bf16 %v1010_v11, %v1006_v5  ;;  %v1051_v5 = vld [vmem:[%s3709_s1 + $0x170] sm:$0xff]  ;;  %v1056_v11 = vld [vmem:[%s3709_s1 + $0x198] sm:$0xff] }
 0x31c   :  { %v3247_v63 = vadd.f32 %v745_v59, %v744_v61  ;;  %v1043_v59 = vld [vmem:[%s3709_s1 + $0x130] sm:$0xff]  ;;  %v1048_v61 = vld [vmem:[%s3709_s1 + $0x158] sm:$0xff]  ;;  %v3427_v17 = vpack.c.bf16 %v1060_v12, %v1056_v11 }
 0x31d   :  { %2313 = vmatprep.subr.bf16.mxu0 %v3264_v8  ;;  %v3398_v60 = vpack.c.bf16 %v1043_v59, %v1039_v57 }
 0x31e   :  { %2615 = vtanh.f32 %v3247_v63 }
 0x328   :  { %v2616_v2 = vpop.eup %2615 }
 0x329   :  { %v748_v6 = vmul.f32 %v2616_v2, %v2614_v1  ;;  %v1052_v1 = vld [vmem:[%s3709_s1 + $0x178] sm:$0xff]  ;;  %v1047_v2 = vld [vmem:[%s3709_s1 + $0x150] sm:$0xff] }
 0x32a   :  { %v3424_v9 = vpack.c.bf16 %v1051_v5, %v1047_v2 }
 0x32b   :  { %2015 = vst [vmem:[%s3711_s2 + $0x10] sm:$0xff] %v748_v6  ;;  %889 = vmatmul.mubr.f32.vlgmr.msra.gmra.mrb[6].mxu0 %v748_v6  ;;  %960 = vmatmul.mubr.f32.vlgmr.msra.gmra.mrb[6].mxu1 %v748_v6  ;;  %v3411_v6 = vpack.c.bf16 %v1052_v1, %v1048_v61 }
 0x32c   :  { %1133 = vmatprep.mubr.f32.mxu0 %v2697_v3  ;;  %1204 = vmatprep.mubr.f32.mxu1 %v2697_v3 }
 0x32d   :  { %2315 = vmatpush1.bf16.msra.mxu0 %v3277_v37  ;;  %2347 = vmatpush1.bf16.msra.mxu1 %v3286_v0 }
 0x32e   :  { %2317 = vmatprep.subr.bf16.mxu0 %v3300_v40  ;;  %2349 = vmatprep.subr.bf16.mxu1 %v3311_v20 }
 0x331   :  { %2319 = vmatpush1.bf16.msra.mxu0 %v3313_v21  ;;  %2351 = vmatpush1.bf16.msra.mxu1 %v3322_v36 }
 0x332   :  { %2321 = vmatprep.subr.bf16.mxu0 %v3336_v42  ;;  %2353 = vmatprep.subr.bf16.mxu1 %v3347_v7 }
 0x335   :  { %2323 = vmatpush1.bf16.msra.mxu0 %v3349_v10  ;;  %2355 = vmatpush1.bf16.msra.mxu1 %v3358_v39 }
 0x336   :  { %2325 = vmatprep.subr.bf16.mxu0 %v3150_v14  ;;  %2357 = vmatprep.subr.bf16.mxu1 %v3370_v44 }
 0x339   :  { %2327 = vmatpush1.bf16.msra.mxu0 %v3158_v26  ;;  %2359 = vmatpush1.bf16.msra.mxu1 %v3378_v51 }
 0x33a   :  { %2329 = vmatprep.subr.bf16.mxu0 %v3168_v45  ;;  %2361 = vmatprep.subr.bf16.mxu1 %v3390_v56 }
 0x33d   :  { %2331 = vmatpush1.bf16.msra.mxu0 %v3176_v62  ;;  %2363 = vmatpush1.bf16.msra.mxu1 %v3398_v60 }
 0x33e   :  { %2333 = vmatprep.subr.bf16.mxu0 %v3189_v31  ;;  %2365 = vmatprep.subr.bf16.mxu1 %v3411_v6 }
 0x341   :  { %2335 = vmatpush1.bf16.msra.mxu0 %v3200_v47  ;;  %2367 = vmatpush1.bf16.msra.mxu1 %v3424_v9 }
 0x342   :  { %2337 = vmatprep.subr.bf16.mxu0 %v3202_v13  ;;  %2369 = vmatprep.subr.bf16.mxu1 %v3427_v17 }
 0x345   :  { %2339 = vmatpush1.bf16.msra.mxu0 %v3218_v23  ;;  %2371 = vmatpush1.bf16.msra.mxu1 %v3444_v18 }
 0x346   :  { %2341 = vmatprep.subr.bf16.mxu0 %v3221_v28  ;;  %2373 = vmatprep.subr.bf16.mxu1 %v3447_v32 }
 0x349   :  { %2343 = vmatpush1.bf16.msra.mxu0 %v3230_v35  ;;  %2375 = vmatpush1.bf16.msra.mxu1 %v3458_v19 }
 0x34a   :  { %2377 = vmatprep.subr.bf16.mxu0 %v3264_v8  ;;  %2409 = vmatprep.subr.bf16.mxu1 %v3275_v33 }
 0x3fe   :  { %v890_v38 = vpop.f32.mrb[6].mxu0  ;;  %v961_v43 = vpop.f32.mrb[6].mxu1 }
 0x3ff   :  { %v966_v30 = vadd.f32 %v2016_v29, %v890_v38  ;;  %v892_v46 = vpop.f32.mrb[7].mxu0  ;;  %v963_v55 = vpop.f32.mrb[7].mxu1  ;;  %v968_v53 = vadd.f32 %v2018_v49, %v961_v43  ;;  %v2025_v29 = vld [vmem:[%s3710_s0 + $0x88] sm:$0xff] }
 0x400   :  { %v967_v58 = vadd.f32 %v2017_v34, %v892_v46  ;;  %v969_v22 = vadd.f32 %v2019_v4, %v963_v55 }
 0x401   :  { %v2020_v24 = vmul.f32 -1.442695, %v966_v30 }
 0x402   :  { %v2021_v27 = vmul.f32 -1.442695, %v967_v58  ;;  %v2022_v50 = vmul.f32 -1.442695, %v969_v22  ;;  %v2026_v22 = vld [vmem:[%s3710_s0 + $0x90] sm:$0xff] }
 0x403   :  { %2617 = vpow2.f32 %v2020_v24 }
 0x404   :  { %2619 = vpow2.f32 %v2021_v27  ;;  %v2027_v27 = vld [vmem:[%s3710_s0 + $0x98] sm:$0xff] }
 0x405   :  { %2621 = vpow2.f32 %v2022_v50 }
 0x406   :  { %2623 = vtanh.f32 %v968_v53 }
 0x40d   :  { %v2618_v54 = vpop.eup %2617 }
 0x40e   :  { %v2620_v57 = vpop.eup %2619  ;;  %v973_v59 = vadd.f32 1.0, %v2618_v54 }
 0x40f   :  { %v979_v61 = vadd.f32 1.0, %v2620_v57  ;;  %v2622_v1 = vpop.eup %2621 }
 0x410   :  { %2625 = vrcp.f32 %v973_v59  ;;  %v2624_v2 = vpop.eup %2623  ;;  %v986_v25 = vadd.f32 1.0, %v2622_v1 }
 0x411   :  { %2627 = vrcp.f32 %v979_v61 }
 0x412   :  { %2629 = vrcp.f32 %v986_v25 }
 0x41a   :  { %v2626_v5 = vpop.eup %2625 }
 0x41b   :  { %v2628_v11 = vpop.eup %2627  ;;  %v990_v12 = vmul.f32 %v2626_v5, %v2624_v2 }
 0x41c   :  { %v989_v48 = vmul.f32 %v2628_v11, %v3247_v63  ;;  %v2630_v15 = vpop.eup %2629  ;;  %v2024_v63 = vld [vmem:[%s3710_s0 + $0x80] sm:$0xff] }
 0x41e   :  { %v3478_v52 = vadd.f32 %v990_v12, %v989_v48 }
 0x420   :  { %2631 = vtanh.f32 %v3478_v52 }
 0x42a   :  { %v2632_v41 = vpop.eup %2631 }
 0x42b   :  { %v993_v16 = vmul.f32 %v2632_v41, %v2630_v15 }
 0x42d   :  { %2023 = vst [vmem:[%s3711_s2 + $0x18] sm:$0xff] %v993_v16  ;;  %1134 = vmatmul.mubr.f32.vlgmr.msra.gmra.mrb[8].mxu0 %v993_v16  ;;  %1205 = vmatmul.mubr.f32.vlgmr.msra.gmra.mrb[8].mxu1 %v993_v16 }
 0x42e   :  { %2379 = vmatpush1.bf16.msra.mxu0 %v3277_v37  ;;  %2411 = vmatpush1.bf16.msra.mxu1 %v3286_v0 }
 0x42f   :  { %2381 = vmatprep.subr.bf16.mxu0 %v3300_v40  ;;  %2413 = vmatprep.subr.bf16.mxu1 %v3311_v20 }
 0x430   :  { %1378 = vmatprep.mubr.f32.mxu0 %v2697_v3  ;;  %1449 = vmatprep.mubr.f32.mxu1 %v2697_v3 }
 0x432   :  { %2383 = vmatpush1.bf16.msra.mxu0 %v3313_v21  ;;  %2415 = vmatpush1.bf16.msra.mxu1 %v3322_v36 }
 0x433   :  { %2385 = vmatprep.subr.bf16.mxu0 %v3336_v42  ;;  %2417 = vmatprep.subr.bf16.mxu1 %v3347_v7 }
 0x436   :  { %2387 = vmatpush1.bf16.msra.mxu0 %v3349_v10  ;;  %2419 = vmatpush1.bf16.msra.mxu1 %v3358_v39 }
 0x437   :  { %2389 = vmatprep.subr.bf16.mxu0 %v3150_v14  ;;  %2421 = vmatprep.subr.bf16.mxu1 %v3370_v44 }
 0x43a   :  { %2391 = vmatpush1.bf16.msra.mxu0 %v3158_v26  ;;  %2423 = vmatpush1.bf16.msra.mxu1 %v3378_v51 }
 0x43b   :  { %2393 = vmatprep.subr.bf16.mxu0 %v3168_v45  ;;  %2425 = vmatprep.subr.bf16.mxu1 %v3390_v56 }
 0x43e   :  { %2395 = vmatpush1.bf16.msra.mxu0 %v3176_v62  ;;  %2427 = vmatpush1.bf16.msra.mxu1 %v3398_v60 }
 0x43f   :  { %2397 = vmatprep.subr.bf16.mxu0 %v3189_v31  ;;  %2429 = vmatprep.subr.bf16.mxu1 %v3411_v6 }
 0x442   :  { %2399 = vmatpush1.bf16.msra.mxu0 %v3200_v47  ;;  %2431 = vmatpush1.bf16.msra.mxu1 %v3424_v9 }
 0x443   :  { %2401 = vmatprep.subr.bf16.mxu0 %v3202_v13  ;;  %2433 = vmatprep.subr.bf16.mxu1 %v3427_v17 }
 0x446   :  { %2403 = vmatpush1.bf16.msra.mxu0 %v3218_v23  ;;  %2435 = vmatpush1.bf16.msra.mxu1 %v3444_v18 }
 0x447   :  { %2405 = vmatprep.subr.bf16.mxu0 %v3221_v28  ;;  %2437 = vmatprep.subr.bf16.mxu1 %v3447_v32 }
 0x44a   :  { %2407 = vmatpush1.bf16.msra.mxu0 %v3230_v35  ;;  %2439 = vmatpush1.bf16.msra.mxu1 %v3458_v19 }
 0x44b   :  { %2441 = vmatprep.subr.bf16.mxu0 %v3264_v8  ;;  %2473 = vmatprep.subr.bf16.mxu1 %v3275_v33 }
 0x500   :  { %v1135_v34 = vpop.f32.mrb[8].mxu0  ;;  %v1206_v38 = vpop.f32.mrb[8].mxu1 }
 0x501   :  { %v1211_v43 = vadd.f32 %v2024_v63, %v1135_v34  ;;  %v1137_v30 = vpop.f32.mrb[9].mxu0  ;;  %v1208_v46 = vpop.f32.mrb[9].mxu1  ;;  %v1213_v50 = vadd.f32 %v2026_v22, %v1206_v38 }
 0x502   :  { %v1212_v55 = vadd.f32 %v2025_v29, %v1137_v30  ;;  %v1214_v4 = vadd.f32 %v2027_v27, %v1208_v46 }
 0x503   :  { %v2028_v58 = vmul.f32 -1.442695, %v1211_v43 }
 0x504   :  { %v2029_v24 = vmul.f32 -1.442695, %v1212_v55  ;;  %v2030_v49 = vmul.f32 -1.442695, %v1214_v4 }
 0x505   :  { %2633 = vpow2.f32 %v2028_v58 }
 0x506   :  { %2635 = vpow2.f32 %v2029_v24 }
 0x507   :  { %2637 = vpow2.f32 %v2030_v49 }
 0x508   :  { %2639 = vtanh.f32 %v1213_v50 }
 0x50f   :  { %v2634_v53 = vpop.eup %2633 }
 0x510   :  { %v2636_v54 = vpop.eup %2635  ;;  %v1218_v57 = vadd.f32 1.0, %v2634_v53 }
 0x511   :  { %v1224_v59 = vadd.f32 1.0, %v2636_v54  ;;  %v2638_v61 = vpop.eup %2637 }
 0x512   :  { %2641 = vrcp.f32 %v1218_v57  ;;  %v2640_v1 = vpop.eup %2639  ;;  %v1231_v12 = vadd.f32 1.0, %v2638_v61  ;;  %v1788_v57 = vld [vmem:[%s3709_s1 + $0x180] sm:$0xff]  ;;  %v1797_v61 = vld [vmem:[%s3709_s1 + $0x1c8] sm:$0xff] }
 0x513   :  { %2643 = vrcp.f32 %v1224_v59  ;;  %v1792_v59 = vld [vmem:[%s3709_s1 + $0x1a0] sm:$0xff] }
 0x514   :  { %2645 = vrcp.f32 %v1231_v12  ;;  %v1800_v12 = vld [vmem:[%s3709_s1 + $0x1e0] sm:$0xff] }
 0x51c   :  { %v2642_v2 = vpop.eup %2641 }
 0x51d   :  { %v2644_v5 = vpop.eup %2643  ;;  %v1235_v11 = vmul.f32 %v2642_v2, %v2640_v1  ;;  %v1801_v1 = vld [vmem:[%s3709_s1 + $0x1e8] sm:$0xff]  ;;  %v2530_v2 = vpack.c.bf16 %v1792_v59, %v1788_v57 }
 0x51e   :  { %v1234_v25 = vmul.f32 %v2644_v5, %v3478_v52  ;;  %v2646_v15 = vpop.eup %2645  ;;  %v2034_v52 = vld [vmem:[%s3710_s0 + $0xb0] sm:$0xff]  ;;  %v2532_v5 = vpack.c.bf16 %v1801_v1, %v1797_v61 }
 0x520   :  { %v3531_v48 = vadd.f32 %v1235_v11, %v1234_v25  ;;  %v1796_v11 = vld [vmem:[%s3709_s1 + $0x1c0] sm:$0xff] }
 0x521   :  { %v2534_v25 = vpack.c.bf16 %v1800_v12, %v1796_v11 }
 0x522   :  { %2647 = vtanh.f32 %v3531_v48 }
 0x52c   :  { %v2648_v41 = vpop.eup %2647 }
 0x52d   :  { %v1238_v16 = vmul.f32 %v2648_v41, %v2646_v15  ;;  %v2041_v15 = vld [vmem:[%s3710_s0 + $0xc8] sm:$0xff] }
 0x52f   :  { %2031 = vst [vmem:[%s3711_s2 + $0x20] sm:$0xff] %v1238_v16  ;;  %1379 = vmatmul.mubr.f32.vlgmr.msra.gmra.mrb[10].mxu0 %v1238_v16  ;;  %1450 = vmatmul.mubr.f32.vlgmr.msra.gmra.mrb[10].mxu1 %v1238_v16 }
 0x530   :  { %2443 = vmatpush1.bf16.msra.mxu0 %v3277_v37  ;;  %2475 = vmatpush1.bf16.msra.mxu1 %v3286_v0 }
 0x531   :  { %2445 = vmatprep.subr.bf16.mxu0 %v3300_v40  ;;  %2477 = vmatprep.subr.bf16.mxu1 %v3311_v20 }
 0x532   :  { %1623 = vmatprep.mubr.f32.mxu0 %v2697_v3  ;;  %1694 = vmatprep.mubr.f32.mxu1 %v2697_v3 }
 0x534   :  { %2447 = vmatpush1.bf16.msra.mxu0 %v3313_v21  ;;  %2479 = vmatpush1.bf16.msra.mxu1 %v3322_v36 }
 0x535   :  { %2449 = vmatprep.subr.bf16.mxu0 %v3336_v42  ;;  %2481 = vmatprep.subr.bf16.mxu1 %v3347_v7 }
 0x538   :  { %2451 = vmatpush1.bf16.msra.mxu0 %v3349_v10  ;;  %2483 = vmatpush1.bf16.msra.mxu1 %v3358_v39 }
 0x539   :  { %2453 = vmatprep.subr.bf16.mxu0 %v3150_v14  ;;  %2485 = vmatprep.subr.bf16.mxu1 %v3370_v44  ;;  %v2032_v14 = vld [vmem:[%s3710_s0 + $0xa0] sm:$0xff] }
 0x53c   :  { %2455 = vmatpush1.bf16.msra.mxu0 %v3158_v26  ;;  %2487 = vmatpush1.bf16.msra.mxu1 %v3378_v51  ;;  %v2033_v26 = vld [vmem:[%s3710_s0 + $0xa8] sm:$0xff] }
 0x53d   :  { %2457 = vmatprep.subr.bf16.mxu0 %v3168_v45  ;;  %2489 = vmatprep.subr.bf16.mxu1 %v3390_v56 }
 0x540   :  { %2459 = vmatpush1.bf16.msra.mxu0 %v3176_v62  ;;  %2491 = vmatpush1.bf16.msra.mxu1 %v3398_v60 }
 0x541   :  { %2461 = vmatprep.subr.bf16.mxu0 %v3189_v31  ;;  %2493 = vmatprep.subr.bf16.mxu1 %v3411_v6 }
 0x544   :  { %2463 = vmatpush1.bf16.msra.mxu0 %v3200_v47  ;;  %2495 = vmatpush1.bf16.msra.mxu1 %v3424_v9 }
 0x545   :  { %2465 = vmatprep.subr.bf16.mxu0 %v3202_v13  ;;  %2497 = vmatprep.subr.bf16.mxu1 %v3427_v17 }
 0x548   :  { %2467 = vmatpush1.bf16.msra.mxu0 %v3218_v23  ;;  %2499 = vmatpush1.bf16.msra.mxu1 %v3444_v18 }
 0x549   :  { %2469 = vmatprep.subr.bf16.mxu0 %v3221_v28  ;;  %2501 = vmatprep.subr.bf16.mxu1 %v3447_v32 }
 0x54c   :  { %2471 = vmatpush1.bf16.msra.mxu0 %v3230_v35  ;;  %2503 = vmatpush1.bf16.msra.mxu1 %v3458_v19 }
 0x54d   :  { %2505 = vmatprep.subr.bf16.mxu0 %v3264_v8  ;;  %2537 = vmatprep.subr.bf16.mxu1 %v3275_v33  ;;  %v2035_v8 = vld [vmem:[%s3710_s0 + $0xb8] sm:$0xff] }
 0x602   :  { %v1380_v45 = vpop.f32.mrb[10].mxu0  ;;  %v1451_v62 = vpop.f32.mrb[10].mxu1 }
 0x603   :  { %v1456_v31 = vadd.f32 %v2032_v14, %v1380_v45  ;;  %v1382_v47 = vpop.f32.mrb[11].mxu0  ;;  %v1453_v13 = vpop.f32.mrb[11].mxu1  ;;  %v1458_v29 = vadd.f32 %v2034_v52, %v1451_v62 }
 0x604   :  { %v1457_v23 = vadd.f32 %v2033_v26, %v1382_v47  ;;  %v1459_v33 = vadd.f32 %v2035_v8, %v1453_v13  ;;  %v2043_v13 = vld [vmem:[%s3710_s0 + $0xd8] sm:$0xff] }
 0x605   :  { %v2036_v28 = vmul.f32 -1.442695, %v1456_v31 }
 0x606   :  { %v2037_v35 = vmul.f32 -1.442695, %v1457_v23  ;;  %v2038_v63 = vmul.f32 -1.442695, %v1459_v33 }
 0x607   :  { %2649 = vpow2.f32 %v2036_v28  ;;  %v2042_v28 = vld [vmem:[%s3710_s0 + $0xd0] sm:$0xff] }
 0x608   :  { %2651 = vpow2.f32 %v2037_v35 }
 0x609   :  { %2653 = vpow2.f32 %v2038_v63 }
 0x60a   :  { %2655 = vtanh.f32 %v1458_v29 }
 0x611   :  { %v2650_v34 = vpop.eup %2649 }
 0x612   :  { %v2652_v38 = vpop.eup %2651  ;;  %v1463_v43 = vadd.f32 1.0, %v2650_v34 }
 0x613   :  { %v1469_v30 = vadd.f32 1.0, %v2652_v38  ;;  %v2654_v46 = vpop.eup %2653 }
 0x614   :  { %2657 = vrcp.f32 %v1463_v43  ;;  %v2656_v55 = vpop.eup %2655  ;;  %v1476_v4 = vadd.f32 1.0, %v2654_v46 }
 0x615   :  { %2659 = vrcp.f32 %v1469_v30 }
 0x616   :  { %2661 = vrcp.f32 %v1476_v4 }
 0x61e   :  { %v2658_v58 = vpop.eup %2657 }
 0x61f   :  { %v2660_v24 = vpop.eup %2659  ;;  %v1480_v27 = vmul.f32 %v2658_v58, %v2656_v55 }
 0x620   :  { %v1479_v22 = vmul.f32 %v2660_v24, %v3531_v48  ;;  %v2662_v50 = vpop.eup %2661  ;;  %v2040_v48 = vld [vmem:[%s3710_s0 + $0xc0] sm:$0xff] }
 0x622   :  { %v3584_v49 = vadd.f32 %v1480_v27, %v1479_v22 }
 0x624   :  { %2663 = vtanh.f32 %v3584_v49 }
 0x62e   :  { %v2664_v53 = vpop.eup %2663 }
 0x62f   :  { %v1483_v54 = vmul.f32 %v2664_v53, %v2662_v50  ;;  %v2048_v50 = vld [vmem:[%s3710_s0 + $0xe0] sm:$0xff] }
 0x631   :  { %2039 = vst [vmem:[%s3711_s2 + $0x28] sm:$0xff] %v1483_v54  ;;  %1624 = vmatmul.mubr.f32.vlgmr.msra.gmra.mrb[12].mxu0 %v1483_v54  ;;  %1695 = vmatmul.mubr.f32.vlgmr.msra.gmra.mrb[12].mxu1 %v1483_v54 }
 0x632   :  { %2507 = vmatpush1.bf16.msra.mxu0 %v3277_v37  ;;  %2539 = vmatpush1.bf16.msra.mxu1 %v3286_v0  ;;  %v1769_v37 = vld [vmem:[%s3709_s1 + $0xe8] sm:$0xff] }
 0x633   :  { %2509 = vmatprep.subr.bf16.mxu0 %v3300_v40  ;;  %2541 = vmatprep.subr.bf16.mxu1 %v3311_v20  ;;  %v1764_v40 = vld [vmem:[%s3709_s1 + $0xc0] sm:$0xff] }
 0x634   :  { %1868 = vmatprep.mubr.f32.mxu0 %v2697_v3  ;;  %1939 = vmatprep.mubr.f32.mxu1 %v2697_v3  ;;  %v1765_v3 = vld [vmem:[%s3709_s1 + $0xc8] sm:$0xff]  ;;  %v1768_v20 = vld [vmem:[%s3709_s1 + $0xe0] sm:$0xff] }
 0x635   :  { %v2516_v0 = vpack.c.bf16 %v1769_v37, %v1765_v3 }
 0x636   :  { %2511 = vmatpush1.bf16.msra.mxu0 %v3313_v21  ;;  %2543 = vmatpush1.bf16.msra.mxu1 %v3322_v36  ;;  %v2518_v21 = vpack.c.bf16 %v1768_v20, %v1764_v40  ;;  %v1773_v36 = vld [vmem:[%s3709_s1 + $0x108] sm:$0xff] }
 0x637   :  { %2513 = vmatprep.subr.bf16.mxu0 %v3336_v42  ;;  %2545 = vmatprep.subr.bf16.mxu1 %v3347_v7  ;;  %v1777_v42 = vld [vmem:[%s3709_s1 + $0x128] sm:$0xff] }
 0x638   :  { %v2520_v7 = vpack.c.bf16 %v1777_v42, %v1773_v36  ;;  %v2051_v36 = vld [vmem:[%s3710_s0 + $0xf8] sm:$0xff] }
 0x63a   :  { %2515 = vmatpush1.bf16.msra.mxu0 %v3349_v10  ;;  %2547 = vmatpush1.bf16.msra.mxu1 %v3358_v39  ;;  %v1772_v10 = vld [vmem:[%s3709_s1 + $0x100] sm:$0xff] }
 0x63b   :  { %2549 = vmatprep.subr.bf16.mxu1 %v3370_v44  ;;  %2517 = vmatprep.subr.bf16.mxu0 %v2516_v0  ;;  %v1776_v39 = vld [vmem:[%s3709_s1 + $0x120] sm:$0xff] }
 0x63c   :  { %v2522_v44 = vpack.c.bf16 %v1776_v39, %v1772_v10 }
 0x63e   :  { %2551 = vmatpush1.bf16.msra.mxu1 %v3378_v51  ;;  %2519 = vmatpush1.bf16.msra.mxu0 %v2518_v21  ;;  %v1781_v51 = vld [vmem:[%s3709_s1 + $0x148] sm:$0xff] }
 0x63f   :  { %2553 = vmatprep.subr.bf16.mxu1 %v3390_v56  ;;  %2521 = vmatprep.subr.bf16.mxu0 %v2520_v7  ;;  %v1785_v56 = vld [vmem:[%s3709_s1 + $0x168] sm:$0xff]  ;;  %v2050_v7 = vld [vmem:[%s3710_s0 + $0xf0] sm:$0xff] }
 0x642   :  { %2555 = vmatpush1.bf16.msra.mxu1 %v3398_v60  ;;  %v1780_v60 = vld [vmem:[%s3709_s1 + $0x140] sm:$0xff]  ;;  %2523 = vmatpush1.bf16.msra.mxu0 %v2522_v44 }
 0x643   :  { %2557 = vmatprep.subr.bf16.mxu1 %v3411_v6  ;;  %v2524_v6 = vpack.c.bf16 %v1785_v56, %v1781_v51 }
 0x645   :  { %2525 = vmatprep.subr.bf16.mxu0 %v2524_v6 }
 0x646   :  { %2559 = vmatpush1.bf16.msra.mxu1 %v3424_v9  ;;  %v1784_v9 = vld [vmem:[%s3709_s1 + $0x160] sm:$0xff] }
 0x647   :  { %2561 = vmatprep.subr.bf16.mxu1 %v3427_v17  ;;  %v1789_v17 = vld [vmem:[%s3709_s1 + $0x188] sm:$0xff] }
 0x64a   :  { %2563 = vmatpush1.bf16.msra.mxu1 %v3444_v18  ;;  %v1793_v18 = vld [vmem:[%s3709_s1 + $0x1a8] sm:$0xff] }
 0x64b   :  { %2565 = vmatprep.subr.bf16.mxu1 %v3447_v32  ;;  %v2526_v32 = vpack.c.bf16 %v1784_v9, %v1780_v60 }
 0x64d   :  { %2527 = vmatpush1.bf16.msra.mxu0 %v2526_v32 }
 0x64e   :  { %2567 = vmatpush1.bf16.msra.mxu1 %v3458_v19  ;;  %v2528_v19 = vpack.c.bf16 %v1793_v18, %v1789_v17 }
 0x650   :  { %2529 = vmatprep.subr.bf16.mxu0 %v2528_v19 }
 0x651   :  { %2531 = vmatpush1.bf16.msra.mxu0 %v2530_v2 }
 0x652   :  { %2533 = vmatprep.subr.bf16.mxu0 %v2532_v5 }
 0x655   :  { %2535 = vmatpush1.bf16.msra.mxu0 %v2534_v25 }
 0x704   :  { %v1625_v41 = vpop.f32.mrb[12].mxu0  ;;  %v1696_v16 = vpop.f32.mrb[12].mxu1 }
 0x705   :  { %v1701_v14 = vadd.f32 %v2040_v48, %v1625_v41  ;;  %v1627_v26 = vpop.f32.mrb[13].mxu0  ;;  %v1698_v45 = vpop.f32.mrb[13].mxu1  ;;  %v1703_v8 = vadd.f32 %v2042_v28, %v1696_v16 }
 0x706   :  { %v1702_v62 = vadd.f32 %v2041_v15, %v1627_v26  ;;  %v1704_v23 = vadd.f32 %v2043_v13, %v1698_v45 }
 0x707   :  { %v2044_v31 = vmul.f32 -1.442695, %v1701_v14 }
 0x708   :  { %v2045_v47 = vmul.f32 -1.442695, %v1702_v62  ;;  %v2046_v35 = vmul.f32 -1.442695, %v1704_v23 }
 0x709   :  { %2665 = vpow2.f32 %v2044_v31 }
 0x70a   :  { %2667 = vpow2.f32 %v2045_v47 }
 0x70b   :  { %2669 = vpow2.f32 %v2046_v35 }
 0x70c   :  { %2671 = vtanh.f32 %v1703_v8 }
 0x713   :  { %v2666_v33 = vpop.eup %2665 }
 0x714   :  { %v2668_v52 = vpop.eup %2667  ;;  %v1708_v63 = vadd.f32 1.0, %v2666_v33 }
 0x715   :  { %v1714_v29 = vadd.f32 1.0, %v2668_v52  ;;  %v2670_v34 = vpop.eup %2669 }
 0x716   :  { %2673 = vrcp.f32 %v1708_v63  ;;  %v2672_v38 = vpop.eup %2671  ;;  %v1721_v55 = vadd.f32 1.0, %v2670_v34 }
 0x717   :  { %2675 = vrcp.f32 %v1714_v29 }
 0x718   :  { %2677 = vrcp.f32 %v1721_v55 }
 0x720   :  { %v2674_v43 = vpop.eup %2673 }
 0x721   :  { %v2676_v30 = vpop.eup %2675  ;;  %v1725_v46 = vmul.f32 %v2674_v43, %v2672_v38 }
 0x722   :  { %v1724_v58 = vmul.f32 %v2676_v30, %v3584_v49  ;;  %v2678_v27 = vpop.eup %2677  ;;  %v2049_v49 = vld [vmem:[%s3710_s0 + $0xe8] sm:$0xff] }
 0x724   :  { %v1726_v24 = vadd.f32 %v1725_v46, %v1724_v58 }
 0x726   :  { %2679 = vtanh.f32 %v1726_v24 }
 0x730   :  { %v2680_v4 = vpop.eup %2679 }
 0x731   :  { %v1728_v22 = vmul.f32 %v2680_v4, %v2678_v27 }
 0x733   :  { %2047 = vst [vmem:[%s3711_s2 + $0x30] sm:$0xff] %v1728_v22  ;;  %1869 = vmatmul.mubr.f32.vlgmr.msra.gmra.mrb[14].mxu0 %v1728_v22  ;;  %1940 = vmatmul.mubr.f32.vlgmr.msra.gmra.mrb[14].mxu1 %v1728_v22 }
 0x806   :  { %v1870_v53 = vpop.f32.mrb[14].mxu0  ;;  %v1941_v54 = vpop.f32.mrb[14].mxu1 }
 0x807   :  { %v1946_v3 = vadd.f32 %v2048_v50, %v1870_v53  ;;  %v1872_v37 = vpop.f32.mrb[15].mxu0  ;;  %v1943_v0 = vpop.f32.mrb[15].mxu1  ;;  %v1948_v39 = vadd.f32 %v2050_v7, %v1941_v54 }
 0x808   :  { %v1947_v40 = vadd.f32 %v2049_v49, %v1872_v37  ;;  %v1949_v42 = vadd.f32 %v2051_v36, %v1943_v0 }
 0x809   :  { %v2052_v20 = vmul.f32 -1.442695, %v1946_v3 }
 0x80a   :  { %v2053_v21 = vmul.f32 -1.442695, %v1947_v40  ;;  %v2054_v10 = vmul.f32 -1.442695, %v1949_v42 }
 0x80b   :  { %2681 = vpow2.f32 %v2052_v20 }
 0x80c   :  { %2683 = vpow2.f32 %v2053_v21 }
 0x80d   :  { %2685 = vpow2.f32 %v2054_v10 }
 0x80e   :  { %2687 = vtanh.f32 %v1948_v39 }
 0x815   :  { %v2682_v44 = vpop.eup %2681 }
 0x816   :  { %v2684_v51 = vpop.eup %2683  ;;  %v1953_v56 = vadd.f32 1.0, %v2682_v44 }
 0x817   :  { %v1959_v60 = vadd.f32 1.0, %v2684_v51  ;;  %v2686_v6 = vpop.eup %2685 }
 0x818   :  { %2689 = vrcp.f32 %v1953_v56  ;;  %v2688_v9 = vpop.eup %2687  ;;  %v1966_v19 = vadd.f32 1.0, %v2686_v6 }
 0x819   :  { %2691 = vrcp.f32 %v1959_v60 }
 0x81a   :  { %2693 = vrcp.f32 %v1966_v19 }
 0x822   :  { %v2690_v17 = vpop.eup %2689 }
 0x823   :  { %v2692_v18 = vpop.eup %2691  ;;  %v1970_v32 = vmul.f32 %v2690_v17, %v2688_v9 }
 0x824   :  { %v1969_v57 = vmul.f32 %v2692_v18, %v1726_v24  ;;  %v2694_v61 = vpop.eup %2693 }
 0x826   :  { %v1971_v59 = vadd.f32 %v1970_v32, %v1969_v57 }
 0x828   :  { %2695 = vtanh.f32 %v1971_v59  ;;  %1984 = vst [vmem:[%s3712_s4] sm:$0xff] %v1971_v59 }
 0x832   :  { %v2696_v1 = vpop.eup %2695 }
 0x833   :  { %v1973_v2 = vmul.f32 %v2696_v1, %v2694_v61 }
 0x835   :  { %2055 = vst [vmem:[%s3711_s2 + $0x38] sm:$0xff] %v1973_v2  ;;  %1982 = vst [vmem:[%s3713_s3] sm:$0xff] %v1973_v2 }

</bundles_post_ra>
